<compile_context>
chip_gen: v7x
topology: tpu7x:2x2x1
jax: 0.10.0
libtpu: 0.0.40
codegen_flags: <defaults>
</compile_context>

<pallas_src>
import functools
import math

import jax
import jax.numpy as jnp
from jax.experimental import pallas as pl
from jax.experimental.pallas import tpu as pltpu


# ----------------------------- helpers (in-kernel) --------------------------

def _layernorm(x, gamma, beta, eps=1e-12):
    mean = jnp.mean(x, axis=-1, keepdims=True)
    var = jnp.mean((x - mean) ** 2, axis=-1, keepdims=True)
    return (x - mean) * jax.lax.rsqrt(var + eps) * gamma + beta


def _gelu(x):
    # TODO(synk): HF BERT uses exact erf-GELU; tanh approximation kept because
    # lax.erf lowering is not guaranteed in Pallas/Mosaic.
    c = math.sqrt(2.0 / math.pi)
    return 0.5 * x * (1.0 + jnp.tanh(c * (x + 0.044715 * x * x * x)))


# ------------------------------ fused Pallas kernel -------------------------

def smb_forward_kernel(p_ref, emb_ref, me_ref, mask_ref,
                       wq_ref, bq_ref, wk_ref, bk_ref, wv_ref, bv_ref,
                       wo_ref, bo_ref,
                       g1_ref, be1_ref, w1_ref, b1_ref,
                       w2_ref, b2_ref, g2_ref, be2_ref,
                       wout_ref, bout_ref,
                       out_ref, x_scr,
                       *, num_heads, head_dim):
    l = pl.program_id(1)
    num_layers = pl.num_programs(1)
    H, D = num_heads, head_dim
    S, E = x_scr.shape

    # ---- prologue (layer 0): soft mix of [MASK] embedding and input embedding
    @pl.when(l == 0)
    def _():
        p = p_ref[...]                                       # (S, 1)
        x_scr[...] = p * me_ref[...] + (1.0 - p) * emb_ref[...]

    # ---- transformer layer l (post-LN BERT layer) on the resident carry -----
    xf = x_scr[...]                                          # (S, E) f32
    # hoisted once, reused by q/k/v head-batched projections
    xh = jnp.broadcast_to(xf.astype(jnp.bfloat16), (H, S, E))

    inv_sqrt_d = 1.0 / math.sqrt(D)
    # head-major projections (H,S,E)@(H,E,D)->(H,S,D): no lane slicing/concat
    q = (jnp.einsum('hse,hed->hsd', xh, wq_ref[...],
                    preferred_element_type=jnp.float32) + bq_ref[...]) * inv_sqrt_d
    k = jnp.einsum('hse,hed->hsd', xh, wk_ref[...],
                   preferred_element_type=jnp.float32) + bk_ref[...]
    v = jnp.einsum('hse,hed->hsd', xh, wv_ref[...],
                   preferred_element_type=jnp.float32) + bv_ref[...]

    scores = jnp.einsum('hqd,hkd->hqk', q.astype(jnp.bfloat16),
                        k.astype(jnp.bfloat16),
                        preferred_element_type=jnp.float32)
    scores = scores + mask_ref[...]                          # (1,1,S) broadcast
    m = jnp.max(scores, axis=-1, keepdims=True)
    e = jnp.exp(scores - m)
    probs = e * pl.reciprocal(jnp.sum(e, axis=-1, keepdims=True), approx=True)
    ctx = jnp.einsum('hqk,hkd->hqd', probs.astype(jnp.bfloat16),
                     v.astype(jnp.bfloat16),
                     preferred_element_type=jnp.float32)     # (H,S,D)

    # output projection batched over heads then reduced over H:
    # avoids any (H,S,D)->(S,E) transpose/concat relayout
    attn = jnp.sum(jnp.einsum('hsd,hde->hse', ctx.astype(jnp.bfloat16),
                              wo_ref[...],
                              preferred_element_type=jnp.float32),
                   axis=0) + bo_ref[...]                     # (S, E)

    x1 = _layernorm(attn + xf, g1_ref[...], be1_ref[...])
    hid = _gelu(jnp.dot(x1.astype(jnp.bfloat16), w1_ref[...],
                        preferred_element_type=jnp.float32) + b1_ref[...])
    ff = jnp.dot(hid.astype(jnp.bfloat16), w2_ref[...],
                 preferred_element_type=jnp.float32) + b2_ref[...]
    x2 = _layernorm(ff + x1, g2_ref[...], be2_ref[...])
    x_scr[...] = x2                                          # carry to next layer

    # ---- epilogue (last layer): residual + vocab projection + log_softmax ---
    # TODO(synk): at a real vocab size, tile V on a grid axis with an online
    # logsumexp; V=128 here is a single lane-dense tile so one matmul suffices.
    @pl.when(l == num_layers - 1)
    def _():
        hfin = x2 + emb_ref[...]                             # (S, E)
        logits = jnp.dot(hfin.astype(jnp.bfloat16), wout_ref[...],
                         preferred_element_type=jnp.float32) + bout_ref[...]
        mx = jnp.max(logits, axis=-1, keepdims=True)
        z = logits - mx
        lse = jnp.log(jnp.sum(jnp.exp(z), axis=-1, keepdims=True))
        out_ref[...] = z - lse


# ------------------------------ model wrapper --------------------------------

class SoftMaskedBertPallas:
    """Deterministic parameters; forward is a single fused Pallas kernel."""

    def __init__(self, key, *, embed_dim=32, num_heads=4, ffn_dim=64,
                 num_layers=2, vocab_size=128):
        assert embed_dim % num_heads == 0
        self.embed_dim = embed_dim
        self.num_heads = num_heads
        self.head_dim = embed_dim // num_heads
        self.ffn_dim = ffn_dim
        self.num_layers = num_layers
        self.vocab_size = vocab_size

        def nrm(k, shape, scale=0.02):
            return scale * jax.random.normal(k, shape, dtype=jnp.float32)

        E, F, L, V = embed_dim, ffn_dim, num_layers, vocab_size
        H, D = num_heads, self.head_dim
        keys = jax.random.split(key, L * 6 + 1)
        wq, wk, wv, wo, w1, w2 = [], [], [], [], [], []
        for li in range(L):
            k = keys[li * 6:(li + 1) * 6]
            wq.append(nrm(k[0], (E, E)))
            wk.append(nrm(k[1], (E, E)))
            wv.append(nrm(k[2], (E, E)))
            wo.append(nrm(k[3], (E, E)))
            w1.append(nrm(k[4], (E, F)))
            w2.append(nrm(k[5], (F, E)))

        bf16 = jnp.bfloat16

        # head-major weight layouts built here (free in XLA) so the kernel
        # never lane-slices / concatenates per head.
        def head_major_in(w):    # (E, E) -> (H, E, D): column block of head h
            return jnp.transpose(w.reshape(E, H, D), (1, 0, 2))

        def head_major_out(w):   # (E, E) -> (H, D, E): row block of head h
            return w.reshape(H, D, E)

        # weights bf16 (MXU inputs, halves VMEM/HBM traffic); biases/LN in f32
        # TODO(synk): int8 weight streaming + in-kernel dequant for v5e/v6e.
        self.params = dict(
            wq=jnp.stack([head_major_in(w) for w in wq]).astype(bf16),   # (L,H,E,D)
            bq=jnp.zeros((L, H, 1, D), jnp.float32),
            wk=jnp.stack([head_major_in(w) for w in wk]).astype(bf16),   # (L,H,E,D)
            bk=jnp.zeros((L, H, 1, D), jnp.float32),
            wv=jnp.stack([head_major_in(w) for w in wv]).astype(bf16),   # (L,H,E,D)
            bv=jnp.zeros((L, H, 1, D), jnp.float32),
            wo=jnp.stack([head_major_out(w) for w in wo]).astype(bf16),  # (L,H,D,E)
            bo=jnp.zeros((L, 1, E), jnp.float32),
            g1=jnp.ones((L, 1, E), jnp.float32),
            be1=jnp.zeros((L, 1, E), jnp.float32),
            w1=jnp.stack(w1).astype(bf16),                               # (L,E,F)
            b1=jnp.zeros((L, 1, F), jnp.float32),
            w2=jnp.stack(w2).astype(bf16),                               # (L,F,E)
            b2=jnp.zeros((L, 1, E), jnp.float32),
            g2=jnp.ones((L, 1, E), jnp.float32),
            be2=jnp.zeros((L, 1, E), jnp.float32),
        )
        self.w_out = nrm(keys[-1], (E, V)).astype(bf16)                  # (E, V)
        self.b_out = jnp.zeros((1, V), jnp.float32)

    def __call__(self, bert_embedding, p, masked_e, input_mask=None):
        B, S, E = bert_embedding.shape
        assert E == self.embed_dim
        V, F, L = self.vocab_size, self.ffn_dim, self.num_layers
        H, D = self.num_heads, self.head_dim

        # 2-D activations end-to-end: flatten in XLA (free contiguous reshape)
        emb2d = bert_embedding.reshape(B * S, E)
        p2d = p.reshape(B * S, 1)
        me2d = masked_e.reshape(1, E)

        # additive attention mask, pre-shaped (B, 1, S) so the kernel never
        # rebuilds the broadcast (0 keep, -1e9 drop; None == keep all)
        if input_mask is None:
            add_mask = jnp.zeros((B, 1, S), jnp.float32)
        else:
            add_mask = ((1.0 - input_mask.astype(jnp.float32)) * -1e9
                        ).reshape(B, 1, S)

        kernel = functools.partial(smb_forward_kernel, num_heads=H, head_dim=D)

        layer = lambda nd: (lambda b, l: (l,) + (0,) * (nd - 1))
        batch = lambda nd: (lambda b, l: (b,) + (0,) * (nd - 1))
        const = lambda nd: (lambda b, l: (0,) * nd)

        in_specs = [
            pl.BlockSpec((S, 1), batch(2)),            # p            (row tile)
            pl.BlockSpec((S, E), batch(2)),            # embedding    (row tile)
            pl.BlockSpec((1, E), const(2)),            # masked_e
            pl.BlockSpec((1, 1, S), batch(3)),         # additive attention mask
            pl.BlockSpec((None, H, E, D), layer(4)),   # wq (layer-streamed)
            pl.BlockSpec((None, H, 1, D), layer(4)),   # bq
            pl.BlockSpec((None, H, E, D), layer(4)),   # wk
            pl.BlockSpec((None, H, 1, D), layer(4)),   # bk
            pl.BlockSpec((None, H, E, D), layer(4)),   # wv
            pl.BlockSpec((None, H, 1, D), layer(4)),   # bv
            pl.BlockSpec((None, H, D, E), layer(4)),   # wo
            pl.BlockSpec((None, 1, E), layer(3)),      # bo
            pl.BlockSpec((None, 1, E), layer(3)),      # ln1 gamma
            pl.BlockSpec((None, 1, E), layer(3)),      # ln1 beta
            pl.BlockSpec((None, E, F), layer(3)),      # ffn w1
            pl.BlockSpec((None, 1, F), layer(3)),      # ffn b1
            pl.BlockSpec((None, F, E), layer(3)),      # ffn w2
            pl.BlockSpec((None, 1, E), layer(3)),      # ffn b2
            pl.BlockSpec((None, 1, E), layer(3)),      # ln2 gamma
            pl.BlockSpec((None, 1, E), layer(3)),      # ln2 beta
            pl.BlockSpec((E, V), const(2)),            # vocab head W
            pl.BlockSpec((1, V), const(2)),            # vocab head b
        ]
        out_spec = pl.BlockSpec((S, V), batch(2))      # resident across layers

        # advisory cost estimate for the XLA scheduler
        flops = int(L * B * (3 * 2 * S * E * E        # q/k/v projections
                             + 2 * 2 * H * S * S * D  # scores + context
                             + 2 * S * E * E          # output projection
                             + 2 * 2 * S * E * F)     # FFN
                    + B * 2 * S * E * V)              # vocab head
        transcendentals = int(L * B * (H * S * S + S * F) + B * S * V)

        prm = self.params
        args = (p2d, emb2d, me2d, add_mask,
                prm['wq'], prm['bq'], prm['wk'], prm['bk'], prm['wv'], prm['bv'],
                prm['wo'], prm['bo'], prm['g1'], prm['be1'], prm['w1'], prm['b1'],
                prm['w2'], prm['b2'], prm['g2'], prm['be2'],
                self.w_out, self.b_out)
        bytes_accessed = int(sum(a.size * a.dtype.itemsize for a in args)
                             + B * S * V * 4)

        # grid = (row/batch tiles, layers): "parallel" row axis feeds v7x's
        # second TensorCore; "arbitrary" layer axis streams weights while the
        # activation carry lives in VMEM scratch.
        # TODO(synk): at real BERT dims, add vmem_limit_bytes and tile FFN
        # weights along F instead of holding the whole layer double-buffered.
        out2d = pl.pallas_call(
            kernel,
            out_shape=jax.ShapeDtypeStruct((B * S, V), jnp.float32),
            grid=(B, L),
            in_specs=in_specs,
            out_specs=out_spec,
            scratch_shapes=[pltpu.VMEM((S, E), jnp.float32)],  # layer carry
            compiler_params=pltpu.CompilerParams(
                dimension_semantics=("parallel", "arbitrary")),
            cost_estimate=pl.CostEstimate(
                flops=flops, transcendentals=transcendentals,
                bytes_accessed=bytes_accessed),
        )(*args)
        return out2d.reshape(B, S, V)


# ---------------------------------- main -------------------------------------

if __name__ == "__main__":
    key = jax.random.PRNGKey(0)
    k_param, k_emb, k_p, k_mask = jax.random.split(key, 4)

    B, S, E, V = 2, 8, 32, 128
    model = SoftMaskedBertPallas(k_param, embed_dim=E, num_heads=4,
                                 ffn_dim=64, num_layers=2, vocab_size=V)

    bert_embedding = jax.random.normal(k_emb, (B, S, E), dtype=jnp.float32)
    p = jax.random.uniform(k_p, (B, S, 1), dtype=jnp.float32)           # error probs
    masked_e = jax.random.normal(k_mask, (1, 1, E), dtype=jnp.float32)  # [MASK] emb
    input_mask = jnp.ones((B, S), dtype=jnp.float32)                    # all valid

    out = model(bert_embedding, p, masked_e, input_mask)
    out = jax.block_until_ready(out)

    assert out.shape == (B, S, V) and out.dtype == jnp.float32
    # log_softmax rows must (approximately) sum to 1 in probability space
    assert bool(jnp.allclose(jnp.sum(jnp.exp(out), axis=-1), 1.0, atol=1e-3))
    print("KERNEL_OK")
</pallas_src>

<mosaic_0001>
module attributes {stable_mosaic.version = 11 : i64} {
  func.func @smb_forward_kernel(%arg0: i32, %arg1: i32, %arg2: memref<8x1xf32, #tpu.memory_space<vmem>>, %arg3: memref<8x32xf32, #tpu.memory_space<vmem>>, %arg4: memref<1x32xf32, #tpu.memory_space<vmem>>, %arg5: memref<1x1x8xf32, #tpu.memory_space<vmem>>, %arg6: memref<1x4x32x8xbf16, #tpu.memory_space<vmem>>, %arg7: memref<1x4x1x8xf32, #tpu.memory_space<vmem>>, %arg8: memref<1x4x32x8xbf16, #tpu.memory_space<vmem>>, %arg9: memref<1x4x1x8xf32, #tpu.memory_space<vmem>>, %arg10: memref<1x4x32x8xbf16, #tpu.memory_space<vmem>>, %arg11: memref<1x4x1x8xf32, #tpu.memory_space<vmem>>, %arg12: memref<1x4x8x32xbf16, #tpu.memory_space<vmem>>, %arg13: memref<1x1x32xf32, #tpu.memory_space<vmem>>, %arg14: memref<1x1x32xf32, #tpu.memory_space<vmem>>, %arg15: memref<1x1x32xf32, #tpu.memory_space<vmem>>, %arg16: memref<1x32x64xbf16, #tpu.memory_space<vmem>>, %arg17: memref<1x1x64xf32, #tpu.memory_space<vmem>>, %arg18: memref<1x64x32xbf16, #tpu.memory_space<vmem>>, %arg19: memref<1x1x32xf32, #tpu.memory_space<vmem>>, %arg20: memref<1x1x32xf32, #tpu.memory_space<vmem>>, %arg21: memref<1x1x32xf32, #tpu.memory_space<vmem>>, %arg22: memref<32x128xbf16, #tpu.memory_space<vmem>>, %arg23: memref<1x128xf32, #tpu.memory_space<vmem>>, %arg24: memref<8x128xf32, #tpu.memory_space<vmem>>, %arg25: memref<8x32xf32, #tpu.memory_space<vmem>>) attributes {dimension_semantics = [#tpu.dimension_semantics<parallel>, #tpu.dimension_semantics<arbitrary>], iteration_bounds = array<i64: 2, 2>, scalar_prefetch = 0 : i64, scratch_operands = 1 : i64, tpu.core_type = #tpu.core_type<tc>, window_params = [{transform_indices = @transform_0, window_bounds = array<i64: 8, 1>}, {transform_indices = @transform_1, window_bounds = array<i64: 8, 32>}, {pipeline_mode = #tpu.pipeline_mode<synchronous>, transform_indices = @transform_2, window_bounds = array<i64: 1, 32>}, {transform_indices = @transform_3, window_bounds = array<i64: 1, 1, 8>}, {transform_indices = @transform_4, window_bounds = array<i64: 1, 4, 32, 8>}, {transform_indices = @transform_5, window_bounds = array<i64: 1, 4, 1, 8>}, {transform_indices = @transform_6, window_bounds = array<i64: 1, 4, 32, 8>}, {transform_indices = @transform_7, window_bounds = array<i64: 1, 4, 1, 8>}, {transform_indices = @transform_8, window_bounds = array<i64: 1, 4, 32, 8>}, {transform_indices = @transform_9, window_bounds = array<i64: 1, 4, 1, 8>}, {transform_indices = @transform_10, window_bounds = array<i64: 1, 4, 8, 32>}, {transform_indices = @transform_11, window_bounds = array<i64: 1, 1, 32>}, {transform_indices = @transform_12, window_bounds = array<i64: 1, 1, 32>}, {transform_indices = @transform_13, window_bounds = array<i64: 1, 1, 32>}, {transform_indices = @transform_14, window_bounds = array<i64: 1, 32, 64>}, {transform_indices = @transform_15, window_bounds = array<i64: 1, 1, 64>}, {transform_indices = @transform_16, window_bounds = array<i64: 1, 64, 32>}, {transform_indices = @transform_17, window_bounds = array<i64: 1, 1, 32>}, {transform_indices = @transform_18, window_bounds = array<i64: 1, 1, 32>}, {transform_indices = @transform_19, window_bounds = array<i64: 1, 1, 32>}, {pipeline_mode = #tpu.pipeline_mode<synchronous>, transform_indices = @transform_20, window_bounds = array<i64: 32, 128>}, {pipeline_mode = #tpu.pipeline_mode<synchronous>, transform_indices = @transform_21, window_bounds = array<i64: 1, 128>}, {transform_indices = @transform_22, window_bounds = array<i64: 8, 128>}]} {
    %c0_i32 = arith.constant 0 : i32
    %0 = arith.cmpi eq, %arg1, %c0_i32 : i32
    %1 = arith.extui %0 : i1 to i32
    %c0_i32_0 = arith.constant 0 : i32
    %2 = arith.cmpi ne, %1, %c0_i32_0 : i32
    scf.if %2 {
      %c0_88 = arith.constant 0 : index
      %c0_89 = arith.constant 0 : index
      %145 = vector.load %arg2[%c0_88, %c0_89] : memref<8x1xf32, #tpu.memory_space<vmem>>, vector<8x1xf32>
      %c0_90 = arith.constant 0 : index
      %c0_91 = arith.constant 0 : index
      %146 = vector.load %arg4[%c0_90, %c0_91] : memref<1x32xf32, #tpu.memory_space<vmem>>, vector<1x32xf32>
      %147 = vector.broadcast %145 : vector<8x1xf32> to vector<8x32xf32>
      %148 = vector.broadcast %146 : vector<1x32xf32> to vector<8x32xf32>
      %149 = arith.mulf %147, %148 : vector<8x32xf32>
      %cst_92 = arith.constant 1.000000e+00 : f32
      %150 = vector.broadcast %cst_92 : f32 to vector<8x1xf32>
      %151 = arith.subf %150, %145 : vector<8x1xf32>
      %c0_93 = arith.constant 0 : index
      %c0_94 = arith.constant 0 : index
      %152 = vector.load %arg3[%c0_93, %c0_94] : memref<8x32xf32, #tpu.memory_space<vmem>>, vector<8x32xf32>
      %153 = vector.broadcast %151 : vector<8x1xf32> to vector<8x32xf32>
      %154 = arith.mulf %153, %152 : vector<8x32xf32>
      %155 = arith.addf %149, %154 : vector<8x32xf32>
      %c0_95 = arith.constant 0 : index
      %c0_96 = arith.constant 0 : index
      %156 = vector.load %arg25[%c0_95, %c0_96] : memref<8x32xf32, #tpu.memory_space<vmem>>, vector<8x32xf32>
      tpu.vector_store %arg25[%c0_95, %c0_96], %155 {strides = array<i32>} : memref<8x32xf32, #tpu.memory_space<vmem>>, vector<8x32xf32>,
    } else {
    }
    %c0 = arith.constant 0 : index
    %c0_1 = arith.constant 0 : index
    %3 = vector.load %arg25[%c0, %c0_1] : memref<8x32xf32, #tpu.memory_space<vmem>>, vector<8x32xf32>
    %4 = arith.truncf %3 : vector<8x32xf32> to vector<8x32xbf16>
    %5 = vector.shape_cast %4 : vector<8x32xbf16> to vector<1x8x32xbf16>
    %6 = vector.broadcast %5 : vector<1x8x32xbf16> to vector<4x8x32xbf16>
    %c0_2 = arith.constant 0 : index
    %c0_3 = arith.constant 0 : index
    %c0_4 = arith.constant 0 : index
    %c0_5 = arith.constant 0 : index
    %7 = vector.load %arg6[%c0_2, %c0_3, %c0_4, %c0_5] : memref<1x4x32x8xbf16, #tpu.memory_space<vmem>>, vector<1x4x32x8xbf16>
    %8 = vector.shape_cast %7 : vector<1x4x32x8xbf16> to vector<4x32x8xbf16>
    "tpu.trace_start"() <{level = 10 : i32, message = "hse,hed->hsd"}> : () -> ()
    %cst = arith.constant dense<0.000000e+00> : vector<4x8x8xf32>
    %9 = tpu.matmul %6, %8, %cst {dimension_numbers = #tpu.dot_dimension_numbers<[2], [1], [1], [2], [0, 0, 0, 1, 1, 2], [0], [0]>} : vector<4x8x32xbf16>, vector<4x32x8xbf16>, vector<4x8x8xf32> -> vector<4x8x8xf32>
    "tpu.trace_stop"() : () -> ()
    %c0_6 = arith.constant 0 : index
    %c0_7 = arith.constant 0 : index
    %c0_8 = arith.constant 0 : index
    %c0_9 = arith.constant 0 : index
    %10 = vector.load %arg7[%c0_6, %c0_7, %c0_8, %c0_9] : memref<1x4x1x8xf32, #tpu.memory_space<vmem>>, vector<1x4x1x8xf32>
    %11 = vector.shape_cast %10 : vector<1x4x1x8xf32> to vector<4x1x8xf32>
    %12 = vector.broadcast %11 : vector<4x1x8xf32> to vector<4x8x8xf32>
    %13 = arith.addf %9, %12 : vector<4x8x8xf32>
    %cst_10 = arith.constant 0.353553385 : f32
    %14 = vector.broadcast %cst_10 : f32 to vector<4x8x8xf32>
    %15 = arith.mulf %13, %14 : vector<4x8x8xf32>
    %c0_11 = arith.constant 0 : index
    %c0_12 = arith.constant 0 : index
    %c0_13 = arith.constant 0 : index
    %c0_14 = arith.constant 0 : index
    %16 = vector.load %arg8[%c0_11, %c0_12, %c0_13, %c0_14] : memref<1x4x32x8xbf16, #tpu.memory_space<vmem>>, vector<1x4x32x8xbf16>
    %17 = vector.shape_cast %16 : vector<1x4x32x8xbf16> to vector<4x32x8xbf16>
    "tpu.trace_start"() <{level = 10 : i32, message = "hse,hed->hsd"}> : () -> ()
    %cst_15 = arith.constant dense<0.000000e+00> : vector<4x8x8xf32>
    %18 = tpu.matmul %6, %17, %cst_15 {dimension_numbers = #tpu.dot_dimension_numbers<[2], [1], [1], [2], [0, 0, 0, 1, 1, 2], [0], [0]>} : vector<4x8x32xbf16>, vector<4x32x8xbf16>, vector<4x8x8xf32> -> vector<4x8x8xf32>
    "tpu.trace_stop"() : () -> ()
    %c0_16 = arith.constant 0 : index
    %c0_17 = arith.constant 0 : index
    %c0_18 = arith.constant 0 : index
    %c0_19 = arith.constant 0 : index
    %19 = vector.load %arg9[%c0_16, %c0_17, %c0_18, %c0_19] : memref<1x4x1x8xf32, #tpu.memory_space<vmem>>, vector<1x4x1x8xf32>
    %20 = vector.shape_cast %19 : vector<1x4x1x8xf32> to vector<4x1x8xf32>
    %21 = vector.broadcast %20 : vector<4x1x8xf32> to vector<4x8x8xf32>
    %22 = arith.addf %18, %21 : vector<4x8x8xf32>
    %c0_20 = arith.constant 0 : index
    %c0_21 = arith.constant 0 : index
    %c0_22 = arith.constant 0 : index
    %c0_23 = arith.constant 0 : index
    %23 = vector.load %arg10[%c0_20, %c0_21, %c0_22, %c0_23] : memref<1x4x32x8xbf16, #tpu.memory_space<vmem>>, vector<1x4x32x8xbf16>
    %24 = vector.shape_cast %23 : vector<1x4x32x8xbf16> to vector<4x32x8xbf16>
    "tpu.trace_start"() <{level = 10 : i32, message = "hse,hed->hsd"}> : () -> ()
    %cst_24 = arith.constant dense<0.000000e+00> : vector<4x8x8xf32>
    %25 = tpu.matmul %6, %24, %cst_24 {dimension_numbers = #tpu.dot_dimension_numbers<[2], [1], [1], [2], [0, 0, 0, 1, 1, 2], [0], [0]>} : vector<4x8x32xbf16>, vector<4x32x8xbf16>, vector<4x8x8xf32> -> vector<4x8x8xf32>
    "tpu.trace_stop"() : () -> ()
    %c0_25 = arith.constant 0 : index
    %c0_26 = arith.constant 0 : index
    %c0_27 = arith.constant 0 : index
    %c0_28 = arith.constant 0 : index
    %26 = vector.load %arg11[%c0_25, %c0_26, %c0_27, %c0_28] : memref<1x4x1x8xf32, #tpu.memory_space<vmem>>, vector<1x4x1x8xf32>
    %27 = vector.shape_cast %26 : vector<1x4x1x8xf32> to vector<4x1x8xf32>
    %28 = vector.broadcast %27 : vector<4x1x8xf32> to vector<4x8x8xf32>
    %29 = arith.addf %25, %28 : vector<4x8x8xf32>
    %30 = arith.truncf %15 : vector<4x8x8xf32> to vector<4x8x8xbf16>
    %31 = arith.truncf %22 : vector<4x8x8xf32> to vector<4x8x8xbf16>
    "tpu.trace_start"() <{level = 10 : i32, message = "hqd,hkd->hqk"}> : () -> ()
    %cst_29 = arith.constant dense<0.000000e+00> : vector<4x8x8xf32>
    %32 = tpu.matmul %30, %31, %cst_29 {dimension_numbers = #tpu.dot_dimension_numbers<[2], [2], [1], [1], [0, 0, 0, 1, 1, 1], [0], [0]>} : vector<4x8x8xbf16>, vector<4x8x8xbf16>, vector<4x8x8xf32> -> vector<4x8x8xf32>
    "tpu.trace_stop"() : () -> ()
    %c0_30 = arith.constant 0 : index
    %c0_31 = arith.constant 0 : index
    %c0_32 = arith.constant 0 : index
    %33 = vector.load %arg5[%c0_30, %c0_31, %c0_32] : memref<1x1x8xf32, #tpu.memory_space<vmem>>, vector<1x1x8xf32>
    %34 = vector.broadcast %33 : vector<1x1x8xf32> to vector<4x8x8xf32>
    %35 = arith.addf %32, %34 : vector<4x8x8xf32>
    %cst_33 = arith.constant dense<0xFF800000> : vector<4x8xf32>
    %36 = vector.multi_reduction <maximumf>, %35, %cst_33 [2] : vector<4x8x8xf32> to vector<4x8xf32>
    %37 = vector.shape_cast %36 : vector<4x8xf32> to vector<4x8x1xf32>
    %38 = vector.broadcast %37 : vector<4x8x1xf32> to vector<4x8x8xf32>
    %39 = arith.subf %35, %38 : vector<4x8x8xf32>
    %40 = math.exp %39 : vector<4x8x8xf32>
    %cst_34 = arith.constant dense<0.000000e+00> : vector<4x8xf32>
    %41 = vector.multi_reduction <add>, %40, %cst_34 [2] : vector<4x8x8xf32> to vector<4x8xf32>
    %42 = vector.shape_cast %41 : vector<4x8xf32> to vector<4x8x1xf32>
    %43 = tpu.reciprocal %42 {approx = true} : vector<4x8x1xf32> -> vector<4x8x1xf32>
    %44 = vector.broadcast %43 : vector<4x8x1xf32> to vector<4x8x8xf32>
    %45 = arith.mulf %40, %44 : vector<4x8x8xf32>
    %46 = arith.truncf %45 : vector<4x8x8xf32> to vector<4x8x8xbf16>
    %47 = arith.truncf %29 : vector<4x8x8xf32> to vector<4x8x8xbf16>
    "tpu.trace_start"() <{level = 10 : i32, message = "hqk,hkd->hqd"}> : () -> ()
    %cst_35 = arith.constant dense<0.000000e+00> : vector<4x8x8xf32>
    %48 = tpu.matmul %46, %47, %cst_35 {dimension_numbers = #tpu.dot_dimension_numbers<[2], [1], [1], [2], [0, 0, 0, 1, 1, 2], [0], [0]>} : vector<4x8x8xbf16>, vector<4x8x8xbf16>, vector<4x8x8xf32> -> vector<4x8x8xf32>
    "tpu.trace_stop"() : () -> ()
    %49 = arith.truncf %48 : vector<4x8x8xf32> to vector<4x8x8xbf16>
    %c0_36 = arith.constant 0 : index
    %c0_37 = arith.constant 0 : index
    %c0_38 = arith.constant 0 : index
    %c0_39 = arith.constant 0 : index
    %50 = vector.load %arg12[%c0_36, %c0_37, %c0_38, %c0_39] : memref<1x4x8x32xbf16, #tpu.memory_space<vmem>>, vector<1x4x8x32xbf16>
    %51 = vector.shape_cast %50 : vector<1x4x8x32xbf16> to vector<4x8x32xbf16>
    "tpu.trace_start"() <{level = 10 : i32, message = "hsd,hde->hse"}> : () -> ()
    %cst_40 = arith.constant dense<0.000000e+00> : vector<4x8x32xf32>
    %52 = tpu.matmul %49, %51, %cst_40 {dimension_numbers = #tpu.dot_dimension_numbers<[2], [1], [1], [2], [0, 0, 0, 1, 1, 2], [0], [0]>} : vector<4x8x8xbf16>, vector<4x8x32xbf16>, vector<4x8x32xf32> -> vector<4x8x32xf32>
    "tpu.trace_stop"() : () -> ()
    %cst_41 = arith.constant dense<0.000000e+00> : vector<8x32xf32>
    %53 = vector.multi_reduction <add>, %52, %cst_41 [0] : vector<4x8x32xf32> to vector<8x32xf32>
    %c0_42 = arith.constant 0 : index
    %c0_43 = arith.constant 0 : index
    %c0_44 = arith.constant 0 : index
    %54 = vector.load %arg13[%c0_42, %c0_43, %c0_44] : memref<1x1x32xf32, #tpu.memory_space<vmem>>, vector<1x1x32xf32>
    %55 = vector.shape_cast %54 : vector<1x1x32xf32> to vector<1x32xf32>
    %56 = vector.broadcast %55 : vector<1x32xf32> to vector<8x32xf32>
    %57 = arith.addf %53, %56 : vector<8x32xf32>
    %58 = arith.addf %57, %3 : vector<8x32xf32>
    %c0_45 = arith.constant 0 : index
    %c0_46 = arith.constant 0 : index
    %c0_47 = arith.constant 0 : index
    %59 = vector.load %arg14[%c0_45, %c0_46, %c0_47] : memref<1x1x32xf32, #tpu.memory_space<vmem>>, vector<1x1x32xf32>
    %60 = vector.shape_cast %59 : vector<1x1x32xf32> to vector<1x32xf32>
    %c0_48 = arith.constant 0 : index
    %c0_49 = arith.constant 0 : index
    %c0_50 = arith.constant 0 : index
    %61 = vector.load %arg15[%c0_48, %c0_49, %c0_50] : memref<1x1x32xf32, #tpu.memory_space<vmem>>, vector<1x1x32xf32>
    %62 = vector.shape_cast %61 : vector<1x1x32xf32> to vector<1x32xf32>
    %cst_51 = arith.constant dense<0.000000e+00> : vector<8xf32>
    %63 = vector.multi_reduction <add>, %58, %cst_51 [1] : vector<8x32xf32> to vector<8xf32>
    %64 = vector.shape_cast %63 : vector<8xf32> to vector<8x1xf32>
    %cst_52 = arith.constant 3.200000e+01 : f32
    %65 = vector.broadcast %cst_52 : f32 to vector<8x1xf32>
    %66 = arith.divf %64, %65 : vector<8x1xf32>
    %67 = vector.broadcast %66 : vector<8x1xf32> to vector<8x32xf32>
    %68 = arith.subf %58, %67 : vector<8x32xf32>
    %69 = arith.mulf %68, %68 : vector<8x32xf32>
    %cst_53 = arith.constant dense<0.000000e+00> : vector<8xf32>
    %70 = vector.multi_reduction <add>, %69, %cst_53 [1] : vector<8x32xf32> to vector<8xf32>
    %71 = vector.shape_cast %70 : vector<8xf32> to vector<8x1xf32>
    %cst_54 = arith.constant 3.200000e+01 : f32
    %72 = vector.broadcast %cst_54 : f32 to vector<8x1xf32>
    %73 = arith.divf %71, %72 : vector<8x1xf32>
    %74 = vector.broadcast %66 : vector<8x1xf32> to vector<8x32xf32>
    %75 = arith.subf %58, %74 : vector<8x32xf32>
    %cst_55 = arith.constant 9.99999996E-13 : f32
    %76 = vector.broadcast %cst_55 : f32 to vector<8x1xf32>
    %77 = arith.addf %73, %76 : vector<8x1xf32>
    %78 = math.rsqrt %77 : vector<8x1xf32>
    %79 = vector.broadcast %78 : vector<8x1xf32> to vector<8x32xf32>
    %80 = arith.mulf %75, %79 : vector<8x32xf32>
    %81 = vector.broadcast %60 : vector<1x32xf32> to vector<8x32xf32>
    %82 = arith.mulf %80, %81 : vector<8x32xf32>
    %83 = vector.broadcast %62 : vector<1x32xf32> to vector<8x32xf32>
    %84 = arith.addf %82, %83 : vector<8x32xf32>
    %85 = arith.truncf %84 : vector<8x32xf32> to vector<8x32xbf16>
    %c0_56 = arith.constant 0 : index
    %c0_57 = arith.constant 0 : index
    %c0_58 = arith.constant 0 : index
    %86 = vector.load %arg16[%c0_56, %c0_57, %c0_58] : memref<1x32x64xbf16, #tpu.memory_space<vmem>>, vector<1x32x64xbf16>
    %87 = vector.shape_cast %86 : vector<1x32x64xbf16> to vector<32x64xbf16>
    %cst_59 = arith.constant dense<0.000000e+00> : vector<8x64xf32>
    %88 = tpu.matmul %85, %87, %cst_59 {dimension_numbers = #tpu.dot_dimension_numbers<[1], [0], [0], [1], [0, 0, 1, 1], [], []>} : vector<8x32xbf16>, vector<32x64xbf16>, vector<8x64xf32> -> vector<8x64xf32>
    %c0_60 = arith.constant 0 : index
    %c0_61 = arith.constant 0 : index
    %c0_62 = arith.constant 0 : index
    %89 = vector.load %arg17[%c0_60, %c0_61, %c0_62] : memref<1x1x64xf32, #tpu.memory_space<vmem>>, vector<1x1x64xf32>
    %90 = vector.shape_cast %89 : vector<1x1x64xf32> to vector<1x64xf32>
    %91 = vector.broadcast %90 : vector<1x64xf32> to vector<8x64xf32>
    %92 = arith.addf %88, %91 : vector<8x64xf32>
    %cst_63 = arith.constant 5.000000e-01 : f32
    %93 = vector.broadcast %cst_63 : f32 to vector<8x64xf32>
    %94 = arith.mulf %93, %92 : vector<8x64xf32>
    %cst_64 = arith.constant 4.471500e-02 : f32
    %95 = vector.broadcast %cst_64 : f32 to vector<8x64xf32>
    %96 = arith.mulf %95, %92 : vector<8x64xf32>
    %97 = arith.mulf %96, %92 : vector<8x64xf32>
    %98 = arith.mulf %97, %92 : vector<8x64xf32>
    %99 = arith.addf %92, %98 : vector<8x64xf32>
    %cst_65 = arith.constant 0.797884583 : f32
    %100 = vector.broadcast %cst_65 : f32 to vector<8x64xf32>
    %101 = arith.mulf %100, %99 : vector<8x64xf32>
    %102 = math.tanh %101 : vector<8x64xf32>
    %cst_66 = arith.constant 1.000000e+00 : f32
    %103 = vector.broadcast %cst_66 : f32 to vector<8x64xf32>
    %104 = arith.addf %103, %102 : vector<8x64xf32>
    %105 = arith.mulf %94, %104 : vector<8x64xf32>
    %106 = arith.truncf %105 : vector<8x64xf32> to vector<8x64xbf16>
    %c0_67 = arith.constant 0 : index
    %c0_68 = arith.constant 0 : index
    %c0_69 = arith.constant 0 : index
    %107 = vector.load %arg18[%c0_67, %c0_68, %c0_69] : memref<1x64x32xbf16, #tpu.memory_space<vmem>>, vector<1x64x32xbf16>
    %108 = vector.shape_cast %107 : vector<1x64x32xbf16> to vector<64x32xbf16>
    %cst_70 = arith.constant dense<0.000000e+00> : vector<8x32xf32>
    %109 = tpu.matmul %106, %108, %cst_70 {dimension_numbers = #tpu.dot_dimension_numbers<[1], [0], [0], [1], [0, 0, 1, 1], [], []>} : vector<8x64xbf16>, vector<64x32xbf16>, vector<8x32xf32> -> vector<8x32xf32>
    %c0_71 = arith.constant 0 : index
    %c0_72 = arith.constant 0 : index
    %c0_73 = arith.constant 0 : index
    %110 = vector.load %arg19[%c0_71, %c0_72, %c0_73] : memref<1x1x32xf32, #tpu.memory_space<vmem>>, vector<1x1x32xf32>
    %111 = vector.shape_cast %110 : vector<1x1x32xf32> to vector<1x32xf32>
    %112 = vector.broadcast %111 : vector<1x32xf32> to vector<8x32xf32>
    %113 = arith.addf %109, %112 : vector<8x32xf32>
    %114 = arith.addf %113, %84 : vector<8x32xf32>
    %c0_74 = arith.constant 0 : index
    %c0_75 = arith.constant 0 : index
    %c0_76 = arith.constant 0 : index
    %115 = vector.load %arg20[%c0_74, %c0_75, %c0_76] : memref<1x1x32xf32, #tpu.memory_space<vmem>>, vector<1x1x32xf32>
    %116 = vector.shape_cast %115 : vector<1x1x32xf32> to vector<1x32xf32>
    %c0_77 = arith.constant 0 : index
    %c0_78 = arith.constant 0 : index
    %c0_79 = arith.constant 0 : index
    %117 = vector.load %arg21[%c0_77, %c0_78, %c0_79] : memref<1x1x32xf32, #tpu.memory_space<vmem>>, vector<1x1x32xf32>
    %118 = vector.shape_cast %117 : vector<1x1x32xf32> to vector<1x32xf32>
    %cst_80 = arith.constant dense<0.000000e+00> : vector<8xf32>
    %119 = vector.multi_reduction <add>, %114, %cst_80 [1] : vector<8x32xf32> to vector<8xf32>
    %120 = vector.shape_cast %119 : vector<8xf32> to vector<8x1xf32>
    %cst_81 = arith.constant 3.200000e+01 : f32
    %121 = vector.broadcast %cst_81 : f32 to vector<8x1xf32>
    %122 = arith.divf %120, %121 : vector<8x1xf32>
    %123 = vector.broadcast %122 : vector<8x1xf32> to vector<8x32xf32>
    %124 = arith.subf %114, %123 : vector<8x32xf32>
    %125 = arith.mulf %124, %124 : vector<8x32xf32>
    %cst_82 = arith.constant dense<0.000000e+00> : vector<8xf32>
    %126 = vector.multi_reduction <add>, %125, %cst_82 [1] : vector<8x32xf32> to vector<8xf32>
    %127 = vector.shape_cast %126 : vector<8xf32> to vector<8x1xf32>
    %cst_83 = arith.constant 3.200000e+01 : f32
    %128 = vector.broadcast %cst_83 : f32 to vector<8x1xf32>
    %129 = arith.divf %127, %128 : vector<8x1xf32>
    %130 = vector.broadcast %122 : vector<8x1xf32> to vector<8x32xf32>
    %131 = arith.subf %114, %130 : vector<8x32xf32>
    %cst_84 = arith.constant 9.99999996E-13 : f32
    %132 = vector.broadcast %cst_84 : f32 to vector<8x1xf32>
    %133 = arith.addf %129, %132 : vector<8x1xf32>
    %134 = math.rsqrt %133 : vector<8x1xf32>
    %135 = vector.broadcast %134 : vector<8x1xf32> to vector<8x32xf32>
    %136 = arith.mulf %131, %135 : vector<8x32xf32>
    %137 = vector.broadcast %116 : vector<1x32xf32> to vector<8x32xf32>
    %138 = arith.mulf %136, %137 : vector<8x32xf32>
    %139 = vector.broadcast %118 : vector<1x32xf32> to vector<8x32xf32>
    %140 = arith.addf %138, %139 : vector<8x32xf32>
    %c0_85 = arith.constant 0 : index
    %c0_86 = arith.constant 0 : index
    %141 = vector.load %arg25[%c0_85, %c0_86] : memref<8x32xf32, #tpu.memory_space<vmem>>, vector<8x32xf32>
    tpu.vector_store %arg25[%c0_85, %c0_86], %140 {strides = array<i32>} : memref<8x32xf32, #tpu.memory_space<vmem>>, vector<8x32xf32>,
    %c1_i32 = arith.constant 1 : i32
    %142 = arith.cmpi eq, %arg1, %c1_i32 : i32
    %143 = arith.extui %142 : i1 to i32
    %c0_i32_87 = arith.constant 0 : i32
    %144 = arith.cmpi ne, %143, %c0_i32_87 : i32
    scf.if %144 {
      %c0_88 = arith.constant 0 : index
      %c0_89 = arith.constant 0 : index
      %145 = vector.load %arg3[%c0_88, %c0_89] : memref<8x32xf32, #tpu.memory_space<vmem>>, vector<8x32xf32>
      %146 = arith.addf %140, %145 : vector<8x32xf32>
      %147 = arith.truncf %146 : vector<8x32xf32> to vector<8x32xbf16>
      %c0_90 = arith.constant 0 : index
      %c0_91 = arith.constant 0 : index
      %148 = vector.load %arg22[%c0_90, %c0_91] : memref<32x128xbf16, #tpu.memory_space<vmem>>, vector<32x128xbf16>
      %cst_92 = arith.constant dense<0.000000e+00> : vector<8x128xf32>
      %149 = tpu.matmul %147, %148, %cst_92 {dimension_numbers = #tpu.dot_dimension_numbers<[1], [0], [0], [1], [0, 0, 1, 1], [], []>} : vector<8x32xbf16>, vector<32x128xbf16>, vector<8x128xf32> -> vector<8x128xf32>
      %c0_93 = arith.constant 0 : index
      %c0_94 = arith.constant 0 : index
      %150 = vector.load %arg23[%c0_93, %c0_94] : memref<1x128xf32, #tpu.memory_space<vmem>>, vector<1x128xf32>
      %151 = vector.broadcast %150 : vector<1x128xf32> to vector<8x128xf32>
      %152 = arith.addf %149, %151 : vector<8x128xf32>
      %cst_95 = arith.constant dense<0xFF800000> : vector<8xf32>
      %153 = vector.multi_reduction <maximumf>, %152, %cst_95 [1] : vector<8x128xf32> to vector<8xf32>
      %154 = vector.shape_cast %153 : vector<8xf32> to vector<8x1xf32>
      %155 = vector.broadcast %154 : vector<8x1xf32> to vector<8x128xf32>
      %156 = arith.subf %152, %155 : vector<8x128xf32>
      %157 = math.exp %156 : vector<8x128xf32>
      %cst_96 = arith.constant dense<0.000000e+00> : vector<8xf32>
      %158 = vector.multi_reduction <add>, %157, %cst_96 [1] : vector<8x128xf32> to vector<8xf32>
      %159 = vector.shape_cast %158 : vector<8xf32> to vector<8x1xf32>
      %160 = math.log %159 : vector<8x1xf32>
      %161 = vector.broadcast %160 : vector<8x1xf32> to vector<8x128xf32>
      %162 = arith.subf %156, %161 : vector<8x128xf32>
      %c0_97 = arith.constant 0 : index
      %c0_98 = arith.constant 0 : index
      %163 = vector.load %arg24[%c0_97, %c0_98] : memref<8x128xf32, #tpu.memory_space<vmem>>, vector<8x128xf32>
      tpu.vector_store %arg24[%c0_97, %c0_98], %162 {strides = array<i32>} : memref<8x128xf32, #tpu.memory_space<vmem>>, vector<8x128xf32>,
    } else {
    }
    return
  }
  func.func @transform_0(%arg0: i32, %arg1: i32) -> (i32, i32) {
    %c0_i32 = arith.constant 0 : i32
    %c0_i32_0 = arith.constant 0 : i32
    return %arg0, %c0_i32 : i32, i32
  }
  func.func @transform_1(%arg0: i32, %arg1: i32) -> (i32, i32) {
    %c0_i32 = arith.constant 0 : i32
    %c0_i32_0 = arith.constant 0 : i32
    return %arg0, %c0_i32 : i32, i32
  }
  func.func @transform_2(%arg0: i32, %arg1: i32) -> (i32, i32) {
    %c0_i32 = arith.constant 0 : i32
    %c0_i32_0 = arith.constant 0 : i32
    %c0_i32_1 = arith.constant 0 : i32
    return %c0_i32, %c0_i32_0 : i32, i32
  }
  func.func @transform_3(%arg0: i32, %arg1: i32) -> (i32, i32, i32) {
    %c0_i32 = arith.constant 0 : i32
    %c0_i32_0 = arith.constant 0 : i32
    %c0_i32_1 = arith.constant 0 : i32
    return %arg0, %c0_i32, %c0_i32_0 : i32, i32, i32
  }
  func.func @transform_4(%arg0: i32, %arg1: i32) -> (i32, i32, i32, i32) {
    %c0_i32 = arith.constant 0 : i32
    %c0_i32_0 = arith.constant 0 : i32
    %c0_i32_1 = arith.constant 0 : i32
    %c0_i32_2 = arith.constant 0 : i32
    return %arg1, %c0_i32, %c0_i32_0, %c0_i32_1 : i32, i32, i32, i32
  }
  func.func @transform_5(%arg0: i32, %arg1: i32) -> (i32, i32, i32, i32) {
    %c0_i32 = arith.constant 0 : i32
    %c0_i32_0 = arith.constant 0 : i32
    %c0_i32_1 = arith.constant 0 : i32
    %c0_i32_2 = arith.constant 0 : i32
    return %arg1, %c0_i32, %c0_i32_0, %c0_i32_1 : i32, i32, i32, i32
  }
  func.func @transform_6(%arg0: i32, %arg1: i32) -> (i32, i32, i32, i32) {
    %c0_i32 = arith.constant 0 : i32
    %c0_i32_0 = arith.constant 0 : i32
    %c0_i32_1 = arith.constant 0 : i32
    %c0_i32_2 = arith.constant 0 : i32
    return %arg1, %c0_i32, %c0_i32_0, %c0_i32_1 : i32, i32, i32, i32
  }
  func.func @transform_7(%arg0: i32, %arg1: i32) -> (i32, i32, i32, i32) {
    %c0_i32 = arith.constant 0 : i32
    %c0_i32_0 = arith.constant 0 : i32
    %c0_i32_1 = arith.constant 0 : i32
    %c0_i32_2 = arith.constant 0 : i32
    return %arg1, %c0_i32, %c0_i32_0, %c0_i32_1 : i32, i32, i32, i32
  }
  func.func @transform_8(%arg0: i32, %arg1: i32) -> (i32, i32, i32, i32) {
    %c0_i32 = arith.constant 0 : i32
    %c0_i32_0 = arith.constant 0 : i32
    %c0_i32_1 = arith.constant 0 : i32
    %c0_i32_2 = arith.constant 0 : i32
    return %arg1, %c0_i32, %c0_i32_0, %c0_i32_1 : i32, i32, i32, i32
  }
  func.func @transform_9(%arg0: i32, %arg1: i32) -> (i32, i32, i32, i32) {
    %c0_i32 = arith.constant 0 : i32
    %c0_i32_0 = arith.constant 0 : i32
    %c0_i32_1 = arith.constant 0 : i32
    %c0_i32_2 = arith.constant 0 : i32
    return %arg1, %c0_i32, %c0_i32_0, %c0_i32_1 : i32, i32, i32, i32
  }
  func.func @transform_10(%arg0: i32, %arg1: i32) -> (i32, i32, i32, i32) {
    %c0_i32 = arith.constant 0 : i32
    %c0_i32_0 = arith.constant 0 : i32
    %c0_i32_1 = arith.constant 0 : i32
    %c0_i32_2 = arith.constant 0 : i32
    return %arg1, %c0_i32, %c0_i32_0, %c0_i32_1 : i32, i32, i32, i32
  }
  func.func @transform_11(%arg0: i32, %arg1: i32) -> (i32, i32, i32) {
    %c0_i32 = arith.constant 0 : i32
    %c0_i32_0 = arith.constant 0 : i32
    %c0_i32_1 = arith.constant 0 : i32
    return %arg1, %c0_i32, %c0_i32_0 : i32, i32, i32
  }
  func.func @transform_12(%arg0: i32, %arg1: i32) -> (i32, i32, i32) {
    %c0_i32 = arith.constant 0 : i32
    %c0_i32_0 = arith.constant 0 : i32
    %c0_i32_1 = arith.constant 0 : i32
    return %arg1, %c0_i32, %c0_i32_0 : i32, i32, i32
  }
  func.func @transform_13(%arg0: i32, %arg1: i32) -> (i32, i32, i32) {
    %c0_i32 = arith.constant 0 : i32
    %c0_i32_0 = arith.constant 0 : i32
    %c0_i32_1 = arith.constant 0 : i32
    return %arg1, %c0_i32, %c0_i32_0 : i32, i32, i32
  }
  func.func @transform_14(%arg0: i32, %arg1: i32) -> (i32, i32, i32) {
    %c0_i32 = arith.constant 0 : i32
    %c0_i32_0 = arith.constant 0 : i32
    %c0_i32_1 = arith.constant 0 : i32
    return %arg1, %c0_i32, %c0_i32_0 : i32, i32, i32
  }
  func.func @transform_15(%arg0: i32, %arg1: i32) -> (i32, i32, i32) {
    %c0_i32 = arith.constant 0 : i32
    %c0_i32_0 = arith.constant 0 : i32
    %c0_i32_1 = arith.constant 0 : i32
    return %arg1, %c0_i32, %c0_i32_0 : i32, i32, i32
  }
  func.func @transform_16(%arg0: i32, %arg1: i32) -> (i32, i32, i32) {
    %c0_i32 = arith.constant 0 : i32
    %c0_i32_0 = arith.constant 0 : i32
    %c0_i32_1 = arith.constant 0 : i32
    return %arg1, %c0_i32, %c0_i32_0 : i32, i32, i32
  }
  func.func @transform_17(%arg0: i32, %arg1: i32) -> (i32, i32, i32) {
    %c0_i32 = arith.constant 0 : i32
    %c0_i32_0 = arith.constant 0 : i32
    %c0_i32_1 = arith.constant 0 : i32
    return %arg1, %c0_i32, %c0_i32_0 : i32, i32, i32
  }
  func.func @transform_18(%arg0: i32, %arg1: i32) -> (i32, i32, i32) {
    %c0_i32 = arith.constant 0 : i32
    %c0_i32_0 = arith.constant 0 : i32
    %c0_i32_1 = arith.constant 0 : i32
    return %arg1, %c0_i32, %c0_i32_0 : i32, i32, i32
  }
  func.func @transform_19(%arg0: i32, %arg1: i32) -> (i32, i32, i32) {
    %c0_i32 = arith.constant 0 : i32
    %c0_i32_0 = arith.constant 0 : i32
    %c0_i32_1 = arith.constant 0 : i32
    return %arg1, %c0_i32, %c0_i32_0 : i32, i32, i32
  }
  func.func @transform_20(%arg0: i32, %arg1: i32) -> (i32, i32) {
    %c0_i32 = arith.constant 0 : i32
    %c0_i32_0 = arith.constant 0 : i32
    %c0_i32_1 = arith.constant 0 : i32
    return %c0_i32, %c0_i32_0 : i32, i32
  }
  func.func @transform_21(%arg0: i32, %arg1: i32) -> (i32, i32) {
    %c0_i32 = arith.constant 0 : i32
    %c0_i32_0 = arith.constant 0 : i32
    %c0_i32_1 = arith.constant 0 : i32
    return %c0_i32, %c0_i32_0 : i32, i32
  }
  func.func @transform_22(%arg0: i32, %arg1: i32) -> (i32, i32) {
    %c0_i32 = arith.constant 0 : i32
    %c0_i32_0 = arith.constant 0 : i32
    return %arg0, %c0_i32 : i32, i32
  }
}

</mosaic_0001>

<bundles_post_ra>
// kernel: tpu_custom_call.1
= control target key start
LH: loop header
LB: loop body
LE: loop exit
PB: predicated region body
PF: predicated region fallthrough
CT: control target
= control target key end

     0   :  { %s4254_s0 = inlined_call_operand.vmem [shape: f32[16,1], index: 0, kind: input, shape index: {}]   ;;  %s4255_s1 = inlined_call_operand.vmem [shape: f32[16,32], index: 1, kind: input, shape index: {}]   ;;  %s4256_s2 = inlined_call_operand.vmem [shape: f32[1,32], index: 2, kind: input, shape index: {}]   ;;  %s4257_s3 = inlined_call_operand.vmem [shape: f32[2,1,8], index: 3, kind: input, shape index: {}]   ;;  %s4258_s4 = inlined_call_operand.vmem [shape: bf16[2,4,32,8], index: 4, kind: input, shape index: {}]   ;;  %s4259_s5 = inlined_call_operand.vmem [shape: f32[2,4,1,8], index: 5, kind: input, shape index: {}]   ;;  %s4260_s6 = inlined_call_operand.vmem [shape: bf16[2,4,32,8], index: 6, kind: input, shape index: {}]   ;;  %s4261_s7 = inlined_call_operand.vmem [shape: f32[2,4,1,8], index: 7, kind: input, shape index: {}]   ;;  %s4262_s8 = inlined_call_operand.vmem [shape: bf16[2,4,32,8], index: 8, kind: input, shape index: {}]   ;;  %s4263_s9 = inlined_call_operand.vmem [shape: f32[2,4,1,8], index: 9, kind: input, shape index: {}]   ;;  %s4264_s10 = inlined_call_operand.vmem [shape: bf16[2,4,8,32], index: 10, kind: input, shape index: {}]   ;;  %s4265_s11 = inlined_call_operand.vmem [shape: f32[2,1,32], index: 11, kind: input, shape index: {}]   ;;  %s4266_s12 = inlined_call_operand.vmem [shape: f32[2,1,32], index: 12, kind: input, shape index: {}]   ;;  %s4267_s13 = inlined_call_operand.vmem [shape: f32[2,1,32], index: 13, kind: input, shape index: {}]   ;;  %s4268_s14 = inlined_call_operand.vmem [shape: bf16[2,32,64], index: 14, kind: input, shape index: {}]   ;;  %s4269_s15 = inlined_call_operand.vmem [shape: f32[2,1,64], index: 15, kind: input, shape index: {}]   ;;  %s4270_s16 = inlined_call_operand.vmem [shape: bf16[2,64,32], index: 16, kind: input, shape index: {}]   ;;  %s4271_s17 = inlined_call_operand.vmem [shape: f32[2,1,32], index: 17, kind: input, shape index: {}]   ;;  %s4272_s18 = inlined_call_operand.vmem [shape: f32[2,1,32], index: 18, kind: input, shape index: {}]   ;;  %s4273_s19 = inlined_call_operand.vmem [shape: f32[2,1,32], index: 19, kind: input, shape index: {}]   ;;  %s4274_s20 = inlined_call_operand.vmem [shape: bf16[32,128], index: 20, kind: input, shape index: {}]   ;;  %s4275_s21 = inlined_call_operand.vmem [shape: f32[1,128], index: 21, kind: input, shape index: {}]   ;;  %s4276_s22 = inlined_call_operand.hbm [shape: f32[16,128], index: 22, kind: output, shape index: {}]  }
   0x1   :  { %4297 = sst [smem:[#allocation23_spill]] %s4254_s0 }
   0x2   :  { %4298 = sst [smem:[#allocation24_spill]] %s4255_s1 }
   0x3   :  { %4299 = sst [smem:[#allocation25_spill]] %s4256_s2 }
   0x4   :  { %4300 = sst [smem:[#allocation26_spill]] %s4257_s3 }
   0x5   :  { %4301 = sst [smem:[#allocation27_spill]] %s4258_s4 }
   0x6   :  { %4302 = sst [smem:[#allocation28_spill]] %s4259_s5 }
   0x7   :  { %4303 = sst [smem:[#allocation29_spill]] %s4260_s6 }
   0x8   :  { %4304 = sst [smem:[#allocation30_spill]] %s4261_s7 }
   0x9   :  { %4305 = sst [smem:[#allocation31_spill]] %s4262_s8 }
   0xa   :  { %4306 = sst [smem:[#allocation32_spill]] %s4263_s9 }
   0xb   :  { %4307 = sst [smem:[#allocation33_spill]] %s4264_s10 }
   0xc   :  { %4308 = sst [smem:[#allocation34_spill]] %s4266_s12 }
   0xd   :  { %4309 = sst [smem:[#allocation35_spill]] %s4267_s13 }
   0xe   :  { %4310 = sst [smem:[#allocation36_spill]] %s4268_s14 }
   0xf   :  { %4311 = sst [smem:[#allocation37_spill]] %s4271_s17 }
  0x10   :  { %4312 = sst [smem:[#allocation38_spill]] %s4272_s18 }
  0x11   :  { %4313 = sst [smem:[#allocation39_spill]] %s4273_s19 }
  0x12   :  { %4314 = sst [smem:[#allocation40_spill]] %s4274_s20 }
  0x13   :  { %4315 = sst [smem:[#allocation41_spill]] %s4275_s21 }
  0x14   :  { %4316 = sst [smem:[#allocation42_spill]] %s4276_s22 }
  0x15   :  { %27 = vsyncpa [#allocation4], 0 }
  0x16   :  { %29 = vsyncpa [#allocation4 + $0x1], 0  ;;  %s3748_s3 = smov 0   ;;  %s3750_s28 = smov 0  }
  0x17   :  { %s3752_s29 = smov 0   ;;  %s3754_s30 = smov 0  }
  0x18   :  { %s3756_s4 = smov 0   ;;  %s3758_s0 = smov 0  }
  0x19   :  { %s3760_s23 = smov 0   ;;  %s3762_s1 = smov 0  }
  0x1a LB: > { %4317 = sst [smem:[#allocation6_spill]] %s3597_s3  ;;  %s3013_s5 = sadd.s32 4294967295, %s3625_s1   ;;  %s3625_s1 = sphi %s3762_s1, %s35_s1   ;;  %s3621_s23 = sphi %s3760_s23, %s4385_s23   ;;  %s3617_s0 = sphi %s3758_s0, %s4384_s0   ;;  %s3613_s4 = sphi %s3756_s4, %s4383_s4   ;;  %s3609_s30 = sphi %s3754_s30, %s4382_s30   ;;  %s3605_s29 = sphi %s3752_s29, %s4381_s29   ;;  %s3601_s28 = sphi %s3750_s28, %s4380_s28   ;;  %s3597_s3 = sphi %s3748_s3, %s4379_s3  }
  0x1b   : > { %4318 = sst [smem:[#allocation7_spill]] %s3601_s28  ;;  %s3014_s24 = sadd.s32 4294967294, %s3625_s1  }
  0x1c   : > { %4319 = sst [smem:[#allocation8_spill]] %s3605_s29  ;;  %s44_s6 = sadd.s32 1, %s3617_s0 }
  0x1d   : > { %4320 = sst [smem:[#allocation9_spill]] %s3609_s30  ;;  %p45_p0 = scmp.ge.s32.totalorder %s44_s6, 2 }
  0x1e   : > { %4321 = sst [smem:[#allocation10_spill]] %s3613_s4  ;;  %s47_s25 = sadd.s32 1, %s3621_s23 }
  0x1f   : > { %4322 = sst [smem:[#allocation11_spill]] %s3617_s0  ;;  %p621_p1 = scmp.ne.s32.totalorder %s3605_s29, %s3601_s28 }
  0x20   : > { %4323 = sst [smem:[#allocation12_spill]] %s3621_s23  ;;  %p622_p2 = scmp.eq.s32.totalorder %s3013_s5, 3 }
  0x21   : > { %4324 = sst [smem:[#allocation13_spill]] %s3625_s1  ;;  %s4387_s6 = smov (%p45_p0, %s44_s6), 0 }
  0x22   : > { %4325 = sst [smem:[#allocation14_spill]] %s4387_s6  ;;  %s4389_s25 = smov (!%p45_p0, %s47_s25), %s3621_s23 }
  0x23   : > { %p3797_p3 = por %p622_p2, %p621_p1  ;;  %p627_p4 = scmp.ne.s32.totalorder %s3601_s28, %s3597_s3 }
  0x24   : > { %p49_p5 = scmp.ge.s32.totalorder %s4389_s25, 2  ;;  %p628_p6 = scmp.eq.s32.totalorder %s3014_s24, 3 }
  0x25   : > { %s4326_s26 = scalar_select %p3797_p3, 1, 0 }
  0x26   : > { %p3017_p7 = scmp.ge.s32.totalorder %s3625_s1, 1  ;;  %p786_p8 = scmp.lt.s32.totalorder %s3625_s1, 5 }
  0x27   : > { %4327 = sst [smem:[#allocation15_spill]] %s4326_s26  ;;  %s4391_s25 = smov (%p49_p5, %s4389_s25), 0 }
  0x28   : > { %4328 = sst [smem:[#allocation16_spill]] %s4391_s25  ;;  %p3807_p9 = por %p628_p6, %p627_p4 }
  0x29   : > { %p787_p10 = pnand %p3017_p7, %p786_p8  ;;  %s608_s27 = ssub.s32 %s3621_s23, %s4391_s25 }
  0x2a   : > { %s4329_s2 = scalar_select %p3807_p9, 1, 0 }
  0x2b   : > { %s611_s5 = sadd.s32 1, %s3605_s29  ;;  %p609_p11 = scmp.eq.s32.totalorder %s608_s27, 0 }
  0x2c   : > { %4330 = sst [smem:[#allocation17_spill]] %s4329_s2  ;;  %790 = sbr.rel (%p787_p10) target bundleno = 3086 (0xc0e), region = 108 }
  0x2d   : > { %s3815_s6 = scalar_select %p609_p11, %s3605_s29, %s611_s5  }
  0x2f   : > { %4331 = sst [smem:[#allocation18_spill]] %s3815_s6 }
  0x33   : > { %s4282_s24 = sand.u32 1, %s3601_s28   ;;  %p917_p12 = scmp.lt.s32.totalorder %s3613_s4, 1 }
  0x34   : > { %s3821_s0 = sshll.u32 %s4282_s24, 3  ;;  %p928_p13 = scmp.lt.s32.totalorder %s3609_s30, 1 }
  0x35   : > { %s3825_s2 = scalar_select %p917_p12, %s3613_s4, 1 }
  0x36   : > { %s3828_s27 = scalar_select %p928_p13, %s3609_s30, 1 }
  0x37   : > { %4332 = sst [smem:[#allocation19_spill]] %s3825_s2  ;;  %s3019_s5 = sshll.u32 %s3825_s2, 3 }
  0x38   : > { %s4334_s1 = sld [smem:[#allocation23_spill]]  ;;  %s4335_s4 = sld [smem:[#allocation24_spill]] }
  0x39   : > { %s3123_s20 = sshll.u32 %s3828_s27, 6  ;;  %s3023_s30 = sshll.u32 %s3828_s27, 2 }
  0x3a   : > { %s4336_s17 = sld [smem:[#allocation27_spill]]  ;;  %s4337_s29 = sld [smem:[#allocation28_spill]] }
  0x3b   : > { %s4339_s26 = sld [smem:[#allocation29_spill]]  ;;  %s4341_s7 = sld [smem:[#allocation30_spill]] }
  0x3c   : > { %s4343_s8 = sld [smem:[#allocation31_spill]]  ;;  %s4344_s9 = sld [smem:[#allocation32_spill]] }
  0x3d   : > { %s4345_s10 = sld [smem:[#allocation33_spill]]  ;;  %s4348_s14 = sld [smem:[#allocation36_spill]] }
  0x3e   : > { %s920_s22 = scalar_lea.vmem %s4334_s1, %s3019_s5  ;;  %s3841_s21 = scalar_lea.vmem %s4335_s4, %s3019_s5 }
  0x3f   : > { %s3126_s1 = sshll.u32 %s3828_s27, 4  ;;  %s4350_s13 = sld [smem:[#allocation38_spill]] }
  0x40   : > { %s3848_s23 = scalar_lea.vmem %s4336_s17, %s3123_s20  ;;  %s3853_s3 = scalar_lea.vmem %s4337_s29, %s3023_s30 }
  0x41   : > { %4338 = sst [smem:[#allocation20_spill]] %s3853_s3  ;;  %s3858_s4 = scalar_lea.vmem %s4339_s26, %s3123_s20 }
  0x42   : > { %4340 = sst [smem:[#allocation21_spill]] %s3858_s4  ;;  %s3863_s18 = scalar_lea.vmem %s4341_s7, %s3023_s30 }
  0x43   : > { %4342 = sst [smem:[#allocation22_spill]] %s3863_s18  ;;  %s3868_s2 = scalar_lea.vmem %s4343_s8, %s3123_s20 }
  0x44   : > { %s3873_s25 = scalar_lea.vmem %s4344_s9, %s3023_s30  ;;  %s3883_s5 = scalar_lea.vmem %s4345_s10, %s3126_s1 }
  0x45   : > { %s3896_s8 = scalar_lea.vmem %s4348_s14, %s3126_s1  ;;  %s976_s3 = scalar_lea.vmem %s4269_s15, %s3828_s27 }
  0x46   : > { %s3128_s4 = sshll.u32 %s3828_s27, 5  ;;  %s4349_s20 = sld [smem:[#allocation37_spill]] }
  0x47   : > { %s3906_s10 = scalar_lea.vmem %s4270_s16, %s3128_s4  ;;  %s987_s30 = scalar_lea.vmem %s4350_s13, %s3828_s27 }
  0x48   : > { %s4351_s14 = sld [smem:[#allocation39_spill]]  ;;  %s916_s28 = scalar_lea.vmem [#allocation3], %s3821_s0 }
  0x49   : > { %s4352_s26 = sld [smem:[#allocation9_spill]] }
  0x4c   : > { %s984_s17 = scalar_lea.vmem %s4349_s20, %s3828_s27 }
  0x4e   : > { %s990_s12 = scalar_lea.vmem %s4351_s14, %s3828_s27 }
  0x4f   : > { %p3036_p0 = scmp.ne.s32.totalorder %s4352_s26, 0 }
  0x50   : > { %v996_v0 = vld [vmem:[%s920_s22] sm:$0xff] (!%p3036_p0)  ;;  %v3627_v1 = vmov (!%p3036_p0), 0   ;;  %s4353_s6 = sld [smem:[#allocation25_spill]] (!%p3036_p0)  ;;  %vm1019_vm0 = vcmask (!%p3036_p0), 261120  }
  0x51   : > { %995 = sbr.rel (%p3036_p0) target bundleno = 219 (0xdb), region = 112  ;;  %3472 = vset.pattern.permute.xlu0 (!%p3036_p0), %v3627_v1  ;;  %v1010_v2 = vsub.f32 (!%p3036_p0), 1.0, %v996_v0  ;;  %v1011_v5 = vld [vmem:[%s3841_s21] sm:$0xff] (!%p3036_p0) }
  0x52   : > { %1000 = vperm.xlu0 (!%p3036_p0), %3472, %v996_v0  }
  0x56   : > { %1014 = vperm.xlu0 (!%p3036_p0), %3472, %v1010_v2   ;;  %v3037_v4 = vld [vmem:[%s4353_s6] ss:$0 sm:$0xff] (!%p3036_p0) }
  0xd1   : > { %v1001_v3 = vpop.permute.xlu0 %1000 }
  0xd2   : > { %v1009_v7 = vmul.f32 %v3037_v4, %v1001_v3 }
  0xd5   : > { %v1015_v6 = vpop.permute.xlu0 %1014 }
  0xd6   : > { %v1017_v8 = vmul.f32 %v1015_v6, %v1011_v5 }
  0xd8   : > { %v1018_v9 = vadd.f32 %v1017_v8, %v1009_v7 }
  0xda   : > { %1020 = vst.msk [vmem:[#allocation2] sm:$0xff] %vm1019_vm0, %v1018_v9 }
  0xdb PF: > { %v3473_v10 = vld [vmem:[%s3848_s23] sm:$0xff]   ;;  %v3628_v11 = vmov 0.0   ;;  %v3474_v12 = vld [vmem:[%s3848_s23 + $0x10] sm:$0xff]   ;;  %v3475_v13 = vld [vmem:[%s3848_s23 + $0x8] sm:$0xff]   ;;  %vm3629_vm1 = vmmov 0   ;;  %vm1079_vm2 = vcmask 261120   ;;  %s4360_s18 = scalar_lea.vmem %s4265_s11, %s3828_s27 }
  0xdc   : > { %3200 = vmatprep.subr.bf16.mxu0 %v3628_v11  ;;  %3208 = vmatprep.subr.bf16.mxu1 %v3628_v11  ;;  %v3476_v14 = vld [vmem:[%s3848_s23 + $0x18] sm:$0xff]   ;;  %v3477_v17 = vld [vmem:[%s3848_s23 + $0x20] sm:$0xff]   ;;  %s4354_s13 = sld [smem:[#allocation21_spill]]  ;;  %v3478_v18 = vld [vmem:[%s3848_s23 + $0x30] sm:$0xff]   ;;  %s4355_s14 = sld [smem:[#allocation22_spill]]  ;;  %vm1802_vm3 = vcmask 64512  }
  0xdd   : > { %3201 = vmatpush3.bf16.msra.mxu0 %v3473_v10  ;;  %3204 = vmatprep.mubr.msk.bf16.mxu0 %vm3629_vm1, %v3628_v11  ;;  %v3479_v19 = vld [vmem:[%s3848_s23 + $0x28] sm:$0xff]   ;;  %v3480_v20 = vld [vmem:[%s3848_s23 + $0x38] sm:$0xff]   ;;  %v3489_v29 = vld [vmem:[%s3868_s2] sm:$0xff]   ;;  %s4356_s22 = sld [smem:[#allocation20_spill]]  ;;  %vm2042_vm4 = vcmask 1043456   ;;  %s4358_s24 = sld [smem:[#allocation26_spill]] }
  0xde   : > { %3209 = vmatpush3.bf16.msra.mxu1 %v3474_v12  ;;  %3202 = vmatprep.subr.bf16.mxu0 %v3628_v11  ;;  %v3490_v30 = vld [vmem:[%s3868_s2 + $0x10] sm:$0xff]   ;;  %v3491_v31 = vld [vmem:[%s3868_s2 + $0x8] sm:$0xff]   ;;  %v3492_v32 = vld [vmem:[%s3868_s2 + $0x18] sm:$0xff]   ;;  %s4361_s29 = sld [smem:[#allocation34_spill]]  ;;  %vm2578_vm5 = vcmask 523264  }
  0xdf   : > { %3210 = vmatprep.subr.bf16.mxu1 %v3628_v11  ;;  %3212 = vmatprep.mubr.msk.bf16.mxu1 %vm3629_vm1, %v3628_v11  ;;  %v3493_v33 = vld [vmem:[%s3868_s2 + $0x20] sm:$0xff]   ;;  %v3494_v34 = vld [vmem:[%s3868_s2 + $0x30] sm:$0xff]   ;;  %v3495_v35 = vld [vmem:[%s3868_s2 + $0x28] sm:$0xff]  }
  0xe0   : > { %v3496_v36 = vld [vmem:[%s3868_s2 + $0x38] sm:$0xff]   ;;  %s4357_s2 = sld [smem:[#allocation19_spill]] }
  0xe1   : > { %v3938_v15 = vld [vmem:[#allocation2] sm:$0xff]  ;;  %3203 = vmatpush3.bf16.msra.mxu0 %v3475_v13 }
  0xe2   : > { %v3942_v16 = vpack.c.bf16 %v3938_v15, %v3938_v15  ;;  %3211 = vmatpush3.bf16.msra.mxu1 %v3476_v14  ;;  %3216 = vmatprep.subr.bf16.mxu0 %v3628_v11  ;;  %v3481_v21 = vld [vmem:[%s4354_s13] sm:$0xff]   ;;  %v3482_v22 = vld [vmem:[%s4354_s13 + $0x10] sm:$0xff]   ;;  %v3483_v23 = vld [vmem:[%s4354_s13 + $0x8] sm:$0xff]  }
  0xe3   : > { %3224 = vmatprep.subr.bf16.mxu1 %v3628_v11  ;;  %v3484_v24 = vld [vmem:[%s4354_s13 + $0x18] sm:$0xff]   ;;  %v3485_v25 = vld [vmem:[%s4354_s13 + $0x20] sm:$0xff]   ;;  %v3486_v26 = vld [vmem:[%s4354_s13 + $0x30] sm:$0xff]  }
  0xe4   : > { %3205 = vmatmul.mubr.msk.bf16.vlgmr.msra.gmra.mrb[0].mxu0 %vm1079_vm2, %v3942_v16  ;;  %v3487_v27 = vld [vmem:[%s4354_s13 + $0x28] sm:$0xff]   ;;  %v3488_v28 = vld [vmem:[%s4354_s13 + $0x38] sm:$0xff]   ;;  %v3054_v53 = vld [vmem:[%s4355_s14] ss:$0 sm:$0xff]  ;;  %s4362_s26 = scalar_lea.vmem %s4361_s29, %s3828_s27 }
  0xe5   : > { %3213 = vmatmul.mubr.msk.bf16.vlgmr.msra.gmra.mrb[0].mxu1 %vm1079_vm2, %v3942_v16  ;;  %3217 = vmatpush3.bf16.msra.mxu0 %v3477_v17  ;;  %v3055_v54 = vld [vmem:[%s4355_s14 + $0x1] ss:$0 sm:$0xff]  ;;  %v3038_v55 = vld [vmem:[%s4356_s22] ss:$0 sm:$0xff]  ;;  %v3056_v9 = vld [vmem:[%s4355_s14 + $0x2] ss:$0 sm:$0xff] }
  0xe6   : > { %3225 = vmatpush3.bf16.msra.mxu1 %v3478_v18  ;;  %3218 = vmatprep.subr.bf16.mxu0 %v3628_v11  ;;  %v3039_v57 = vld [vmem:[%s4356_s22 + $0x1] ss:$0 sm:$0xff]  ;;  %v3057_v12 = vld [vmem:[%s4355_s14 + $0x3] ss:$0 sm:$0xff]  ;;  %v3040_v14 = vld [vmem:[%s4356_s22 + $0x2] ss:$0 sm:$0xff]  ;;  %s4359_s7 = scalar_lea.vmem %s4358_s24, %s4357_s2 }
  0xe7   : > { %3226 = vmatprep.subr.bf16.mxu1 %v3628_v11  ;;  %3220 = vmatprep.mubr.msk.bf16.mxu0 %vm3629_vm1, %v3628_v11  ;;  %v3041_v17 = vld [vmem:[%s4356_s22 + $0x3] ss:$0 sm:$0xff] }
  0xe8   : > { %3228 = vmatprep.mubr.msk.bf16.mxu1 %vm3629_vm1, %v3628_v11 }
  0xe9   : > { %3219 = vmatpush3.bf16.msra.mxu0 %v3479_v19 }
  0xea   : > { %3227 = vmatpush3.bf16.msra.mxu1 %v3480_v20  ;;  %3232 = vmatprep.subr.bf16.mxu0 %v3628_v11 }
  0xeb   : > { %3240 = vmatprep.subr.bf16.mxu1 %v3628_v11 }
  0xec   : > { %3221 = vmatmul.mubr.msk.bf16.vlgmr.msra.gmra.mrb[4].mxu0 %vm1079_vm2, %v3942_v16 }
  0xed   : > { %3229 = vmatmul.mubr.msk.bf16.vlgmr.msra.gmra.mrb[4].mxu1 %vm1079_vm2, %v3942_v16  ;;  %3233 = vmatpush3.bf16.msra.mxu0 %v3481_v21 }
  0xee   : > { %3241 = vmatpush3.bf16.msra.mxu1 %v3482_v22  ;;  %3234 = vmatprep.subr.bf16.mxu0 %v3628_v11 }
  0xef   : > { %3242 = vmatprep.subr.bf16.mxu1 %v3628_v11  ;;  %3236 = vmatprep.mubr.msk.bf16.mxu0 %vm3629_vm1, %v3628_v11 }
  0xf0   : > { %3244 = vmatprep.mubr.msk.bf16.mxu1 %vm3629_vm1, %v3628_v11 }
  0xf1   : > { %3235 = vmatpush3.bf16.msra.mxu0 %v3483_v23 }
  0xf2   : > { %3243 = vmatpush3.bf16.msra.mxu1 %v3484_v24  ;;  %3248 = vmatprep.subr.bf16.mxu0 %v3628_v11 }
  0xf3   : > { %3256 = vmatprep.subr.bf16.mxu1 %v3628_v11 }
  0xf4   : > { %3237 = vmatmul.mubr.msk.bf16.vlgmr.msra.gmra.mrb[8].mxu0 %vm1079_vm2, %v3942_v16 }
  0xf5   : > { %3245 = vmatmul.mubr.msk.bf16.vlgmr.msra.gmra.mrb[8].mxu1 %vm1079_vm2, %v3942_v16  ;;  %3249 = vmatpush3.bf16.msra.mxu0 %v3485_v25 }
  0xf6   : > { %3257 = vmatpush3.bf16.msra.mxu1 %v3486_v26  ;;  %3250 = vmatprep.subr.bf16.mxu0 %v3628_v11 }
  0xf7   : > { %3258 = vmatprep.subr.bf16.mxu1 %v3628_v11  ;;  %3252 = vmatprep.mubr.msk.bf16.mxu0 %vm3629_vm1, %v3628_v11 }
  0xf8   : > { %3260 = vmatprep.mubr.msk.bf16.mxu1 %vm3629_vm1, %v3628_v11 }
  0xf9   : > { %3251 = vmatpush3.bf16.msra.mxu0 %v3487_v27 }
  0xfa   : > { %3259 = vmatpush3.bf16.msra.mxu1 %v3488_v28  ;;  %3264 = vmatprep.subr.bf16.mxu0 %v3628_v11 }
  0xfb   : > { %3272 = vmatprep.subr.bf16.mxu1 %v3628_v11 }
  0xfc   : > { %3253 = vmatmul.mubr.msk.bf16.vlgmr.msra.gmra.mrb[12].mxu0 %vm1079_vm2, %v3942_v16 }
  0xfd   : > { %3261 = vmatmul.mubr.msk.bf16.vlgmr.msra.gmra.mrb[12].mxu1 %vm1079_vm2, %v3942_v16  ;;  %3265 = vmatpush3.bf16.msra.mxu0 %v3489_v29 }
  0xfe   : > { %3266 = vmatprep.subr.bf16.mxu0 %v3628_v11  ;;  %3268 = vmatprep.mubr.msk.bf16.mxu0 %vm3629_vm1, %v3628_v11 }
  0xff   : > { %3276 = vmatprep.mubr.msk.bf16.mxu1 %vm3629_vm1, %v3628_v11  ;;  %3273 = vmatpush3.bf16.msra.mxu1 %v3490_v30 }
 0x100   : > { %3274 = vmatprep.subr.bf16.mxu1 %v3628_v11 }
 0x101   : > { %3267 = vmatpush3.bf16.msra.mxu0 %v3491_v31 }
 0x102   : > { %3280 = vmatprep.subr.bf16.mxu0 %v3628_v11 }
 0x103   : > { %3275 = vmatpush3.bf16.msra.mxu1 %v3492_v32 }
 0x104   : > { %3269 = vmatmul.mubr.msk.bf16.vlgmr.msra.gmra.mrb[16].mxu0 %vm1079_vm2, %v3942_v16  ;;  %3288 = vmatprep.subr.bf16.mxu1 %v3628_v11 }
 0x105   : > { %3284 = vmatprep.mubr.msk.bf16.mxu0 %vm3629_vm1, %v3628_v11  ;;  %3281 = vmatpush3.bf16.msra.mxu0 %v3493_v33 }
 0x106   : > { %3277 = vmatmul.mubr.msk.bf16.vlgmr.msra.gmra.mrb[16].mxu1 %vm1079_vm2, %v3942_v16  ;;  %3282 = vmatprep.subr.bf16.mxu0 %v3628_v11 }
 0x107   : > { %3289 = vmatpush3.bf16.msra.mxu1 %v3494_v34  ;;  %3292 = vmatprep.mubr.msk.bf16.mxu1 %vm3629_vm1, %v3628_v11 }
 0x108   : > { %3290 = vmatprep.subr.bf16.mxu1 %v3628_v11 }
 0x109   : > { %3283 = vmatpush3.bf16.msra.mxu0 %v3495_v35 }
 0x10a   : > { %3296 = vmatprep.subr.bf16.mxu0 %v3628_v11 }
 0x10b   : > { %3291 = vmatpush3.bf16.msra.mxu1 %v3496_v36 }
 0x10c   : > { %3302 = vmatprep.subr.bf16.mxu1 %v3628_v11  ;;  %3285 = vmatmul.mubr.msk.bf16.vlgmr.msra.gmra.mrb[20].mxu0 %vm1079_vm2, %v3942_v16 }
 0x10d   : > { %3298 = vmatprep.mubr.msk.bf16.mxu0 %vm3629_vm1, %v3628_v11 }
 0x10e   : > { %3293 = vmatmul.mubr.msk.bf16.vlgmr.msra.gmra.mrb[20].mxu1 %vm1079_vm2, %v3942_v16 }
 0x10f   : > { %3304 = vmatprep.mubr.msk.bf16.mxu1 %vm3629_vm1, %v3628_v11 }
 0x1b7   : > { %v1117_v37 = vpop.f32.mrb[0].mxu0 }
 0x1b8   : > { %v3206_v38 = vpop.f32.mrb[1].mxu0  ;;  %v1169_v39 = vpop.f32.mrb[0].mxu1  ;;  %v1118_v0 = vadd.f32 %v3038_v55, %v1117_v37 }
 0x1b9   : > { %v1120_v40 = vpop.f32.mrb[2].mxu0  ;;  %v3214_v41 = vpop.f32.mrb[1].mxu1  ;;  %v1170_v4 = vadd.f32 %v3039_v57, %v1169_v39  ;;  %v3070_v39 = vld [vmem:[%s3873_s25] ss:$0 sm:$0xff] }
 0x1ba   : > { %v3207_v42 = vpop.f32.mrb[3].mxu0  ;;  %v1172_v43 = vpop.f32.mrb[2].mxu1  ;;  %v1279_v10 = vmul.f32 0.35355338, %v1118_v0  ;;  %v3071_v41 = vld [vmem:[%s3873_s25 + $0x1] ss:$0 sm:$0xff] }
 0x1bb   : > { %v3215_v44 = vpop.f32.mrb[3].mxu1  ;;  %v1280_v13 = vmul.f32 0.35355338, %v1170_v4 }
 0x1bc   : > { %v1787_v24 = vpack.c.bf16 %v1279_v10, %v1279_v10 }
 0x1bd   : > { %v1788_v29 = vpack.c.bf16 %v1280_v13, %v1280_v13 }
 0x1bf   : > { %v1221_v45 = vpop.f32.mrb[4].mxu0 }
 0x1c0   : > { %v3222_v46 = vpop.f32.mrb[5].mxu0  ;;  %v1273_v47 = vpop.f32.mrb[4].mxu1  ;;  %v1222_v25 = vadd.f32 %v3040_v14, %v1221_v45 }
 0x1c1   : > { %v1224_v48 = vpop.f32.mrb[6].mxu0  ;;  %v3230_v49 = vpop.f32.mrb[5].mxu1  ;;  %v1274_v30 = vadd.f32 %v3041_v17, %v1273_v47 }
 0x1c2   : > { %v3223_v50 = vpop.f32.mrb[7].mxu0  ;;  %v1276_v51 = vpop.f32.mrb[6].mxu1  ;;  %v1281_v35 = vmul.f32 0.35355338, %v1222_v25 }
 0x1c3   : > { %v3231_v52 = vpop.f32.mrb[7].mxu1  ;;  %v1282_v36 = vmul.f32 0.35355338, %v1274_v30 }
 0x1c4   : > { %v1789_v37 = vpack.c.bf16 %v1281_v35, %v1281_v35 }
 0x1c5   : > { %v1790_v38 = vpack.c.bf16 %v1282_v36, %v1282_v36 }
 0x1c7   : > { %v1373_v56 = vpop.f32.mrb[8].mxu0 }
 0x1c8   : > { %v1374_v58 = vadd.f32 %v3054_v53, %v1373_v56  ;;  %v1425_v59 = vpop.f32.mrb[8].mxu1  ;;  %v3238_v60 = vpop.f32.mrb[9].mxu0 }
 0x1c9   : > { %v1426_v61 = vadd.f32 %v3055_v54, %v1425_v59  ;;  %v1376_v62 = vpop.f32.mrb[10].mxu0  ;;  %v3246_v63 = vpop.f32.mrb[9].mxu1 }
 0x1ca   : > { %v1791_v1 = vpack.c.bf16 %v1374_v58, %v1374_v58  ;;  %v3239_v2 = vpop.f32.mrb[11].mxu0  ;;  %v1428_v3 = vpop.f32.mrb[10].mxu1  ;;  %v3086_v63 = vld [vmem:[%s4359_s7] ss:$0 sm:$0xff] }
 0x1cb   : > { %v1792_v5 = vpack.c.bf16 %v1426_v61, %v1426_v61  ;;  %v3247_v6 = vpop.f32.mrb[11].mxu1 }
 0x1cc   : > { %v1807_v7 = vsel %vm1802_vm3, %v1791_v1, 0 }
 0x1cd   : > { %v1853_v8 = vsel %vm1802_vm3, %v1792_v5, 0  ;;  %3297 = vmatpush3.bf16.xpose.msra.mxu0 %v1807_v7 }
 0x1ce   : > { %3303 = vmatpush3.bf16.xpose.msra.mxu1 %v1853_v8  ;;  %3308 = vmatprep.subr.bf16.mxu0 %v3628_v11 }
 0x1cf   : > { %v1477_v16 = vpop.f32.mrb[12].mxu0  ;;  %3314 = vmatprep.subr.bf16.mxu1 %v3628_v11 }
 0x1d0   : > { %v1478_v18 = vadd.f32 %v3056_v9, %v1477_v16  ;;  %v1529_v19 = vpop.f32.mrb[12].mxu1  ;;  %v3254_v20 = vpop.f32.mrb[13].mxu0 }
 0x1d1   : > { %v1530_v21 = vadd.f32 %v3057_v12, %v1529_v19  ;;  %v1480_v22 = vpop.f32.mrb[14].mxu0  ;;  %v3262_v23 = vpop.f32.mrb[13].mxu1 }
 0x1d2   : > { %v1793_v26 = vpack.c.bf16 %v1478_v18, %v1478_v18  ;;  %v3255_v27 = vpop.f32.mrb[15].mxu0  ;;  %v1532_v28 = vpop.f32.mrb[14].mxu1 }
 0x1d3   : > { %v1794_v31 = vpack.c.bf16 %v1530_v21, %v1530_v21  ;;  %v3263_v32 = vpop.f32.mrb[15].mxu1 }
 0x1d4   : > { %v1899_v33 = vsel %vm1802_vm3, %v1793_v26, 0  ;;  %3299 = vmatmul.mubr.msk.bf16.vlgmr.msra.gmra.mrb[24].mxu0 %vm1802_vm3, %v1787_v24 }
 0x1d5   : > { %v1945_v34 = vsel %vm1802_vm3, %v1794_v31, 0  ;;  %3305 = vmatmul.mubr.msk.bf16.vlgmr.msra.gmra.mrb[24].mxu1 %vm1802_vm3, %v1788_v29  ;;  %3309 = vmatpush3.bf16.xpose.msra.mxu0 %v1899_v33 }
 0x1d6   : > { %3315 = vmatpush3.bf16.xpose.msra.mxu1 %v1945_v34  ;;  %3310 = vmatprep.mubr.msk.bf16.mxu0 %vm3629_vm1, %v3628_v11 }
 0x1d7   : > { %3316 = vmatprep.mubr.msk.bf16.mxu1 %vm3629_vm1, %v3628_v11  ;;  %3320 = vmatprep.subr.bf16.mxu0 %v3628_v11  ;;  %v1625_v40 = vpop.f32.mrb[16].mxu0 }
 0x1d8   : > { %3326 = vmatprep.subr.bf16.mxu1 %v3628_v11  ;;  %v1626_v42 = vadd.f32 %v3070_v39, %v1625_v40  ;;  %v3270_v43 = vpop.f32.mrb[17].mxu0 }
 0x1d9   : > { %v1628_v44 = vpop.f32.mrb[18].mxu0  ;;  %v1677_v45 = vpop.f32.mrb[16].mxu1 }
 0x1da   : > { %v2035_v46 = vpack.c.bf16 %v1626_v42, %v1626_v42  ;;  %v3271_v47 = vpop.f32.mrb[19].mxu0  ;;  %v1678_v48 = vadd.f32 %v3071_v41, %v1677_v45  ;;  %v3278_v49 = vpop.f32.mrb[17].mxu1 }
 0x1db   : > { %v1680_v50 = vpop.f32.mrb[18].mxu1 }
 0x1dc   : > { %3311 = vmatmul.mubr.msk.bf16.vlgmr.msra.gmra.mrb[28].mxu0 %vm1802_vm3, %v1789_v37  ;;  %v2044_v51 = vsel %vm2042_vm4, %v2035_v46, 0  ;;  %v2036_v52 = vpack.c.bf16 %v1678_v48, %v1678_v48  ;;  %v3279_v53 = vpop.f32.mrb[19].mxu1  ;;  %v3072_v48 = vld [vmem:[%s3873_s25 + $0x2] ss:$0 sm:$0xff] }
 0x1dd   : > { %3317 = vmatmul.mubr.msk.bf16.vlgmr.msra.gmra.mrb[28].mxu1 %vm1802_vm3, %v1790_v38  ;;  %3322 = vmatprep.mubr.msk.bf16.mxu0 %vm3629_vm1, %v3628_v11 }
 0x1de   : > { %3328 = vmatprep.mubr.msk.bf16.mxu1 %vm3629_vm1, %v3628_v11  ;;  %3321 = vmatpush3.bf16.msra.mxu0 %v2044_v51  ;;  %v2090_v54 = vsel %vm2042_vm4, %v2036_v52, 0  ;;  %v3073_v51 = vld [vmem:[%s3873_s25 + $0x3] ss:$0 sm:$0xff]  ;;  %s4368_s25 = sld [smem:[#allocation9_spill]] }
 0x1df   : > { %3332 = vmatprep.subr.bf16.mxu0 %v3628_v11  ;;  %3327 = vmatpush3.bf16.msra.mxu1 %v2090_v54  ;;  %v4068_v55 = vpop.f32.mrb[20].mxu0 }
 0x1e0   : > { %3338 = vmatprep.subr.bf16.mxu1 %v3628_v11  ;;  %v3286_v57 = vpop.f32.mrb[21].mxu0  ;;  %v1730_v49 = vadd.f32 %v3072_v48, %v4068_v55 }
 0x1e1   : > { %v4070_v56 = vpop.f32.mrb[20].mxu1  ;;  %v1732_v59 = vpop.f32.mrb[22].mxu0 }
 0x1e2   : > { %v3294_v58 = vpop.f32.mrb[21].mxu1  ;;  %v3287_v61 = vpop.f32.mrb[23].mxu0  ;;  %v2037_v53 = vpack.c.bf16 %v1730_v49, %v1730_v49  ;;  %v1782_v54 = vadd.f32 %v3073_v51, %v4070_v56  ;;  %v2228_v56 = vld [vmem:[%s3883_s5] sm:$0xf] }
 0x1e3   : > { %v1784_v60 = vpop.f32.mrb[22].mxu1 }
 0x1e4   : > { %v3295_v62 = vpop.f32.mrb[23].mxu1  ;;  %v2136_v61 = vsel %vm2042_vm4, %v2037_v53, 0  ;;  %p3114_p1 = scmp.ne.s32.totalorder %s4368_s25, 1 }
 0x1e5   : > { %v2038_v62 = vpack.c.bf16 %v1782_v54, %v1782_v54  ;;  %s4369_s19 = sld [smem:[#allocation40_spill]] (!%p3114_p1)  ;;  %vm3631_vm6 = vmmov (!%p3114_p1), 0   ;;  %s4370_s29 = sld [smem:[#allocation41_spill]] (!%p3114_p1) }
 0x2a7   : > { %v1843_v0 = vpop.f32.mrb[24].mxu0 }
 0x2a8   : > { %v1844_v1 = vadd.f32 %v3086_v63, %v1843_v0  ;;  %v1889_v2 = vpop.f32.mrb[24].mxu1  ;;  %v3300_v3 = vpop.f32.mrb[25].mxu0 }
 0x2a9   : > { %v3306_v4 = vpop.f32.mrb[25].mxu1  ;;  %v1846_v5 = vpop.f32.mrb[26].mxu0  ;;  %v1890_v6 = vadd.f32 %v3086_v63, %v1889_v2 }
 0x2aa   : > { %v1892_v7 = vpop.f32.mrb[26].mxu1  ;;  %v3301_v8 = vpop.f32.mrb[27].mxu0  ;;  %v1987_v9 = vsel %vm1802_vm3, %v1844_v1, -inf  ;;  %v2236_v4 = vsel %vm2042_vm4, %v2228_v56, 0 }
 0x2ab   : > { %v3307_v10 = vpop.f32.mrb[27].mxu1  ;;  %1988 = vmax.xlane.f32.xlu0 %v1987_v9  ;;  %v1990_v12 = vsel %vm1802_vm3, %v1890_v6, -inf  ;;  %v2229_v8 = vld [vmem:[%s3883_s5 + $0x4] sm:$0xf] }
 0x2ac   : > { %v2282_v9 = vsel %vm2042_vm4, %v2229_v8, 0  ;;  %v2230_v10 = vld [vmem:[%s3883_s5 + $0x8] sm:$0xf] }
 0x2af   : > { %1991 = vmax.xlane.f32.xlu0 %v1990_v12  ;;  %v1935_v13 = vpop.f32.mrb[28].mxu0 }
 0x2b0   : > { %v1981_v14 = vpop.f32.mrb[28].mxu1  ;;  %v1936_v16 = vadd.f32 %v3086_v63, %v1935_v13  ;;  %v3312_v17 = vpop.f32.mrb[29].mxu0 }
 0x2b1   : > { %v3318_v18 = vpop.f32.mrb[29].mxu1  ;;  %v1938_v19 = vpop.f32.mrb[30].mxu0  ;;  %v1982_v20 = vadd.f32 %v3086_v63, %v1981_v14 }
 0x2b2   : > { %v1984_v21 = vpop.f32.mrb[30].mxu1  ;;  %v3313_v22 = vpop.f32.mrb[31].mxu0  ;;  %v1993_v23 = vsel %vm1802_vm3, %v1936_v16, -inf  ;;  %v2231_v18 = vld [vmem:[%s3883_s5 + $0xc] sm:$0xf] }
 0x2b3   : > { %v3319_v24 = vpop.f32.mrb[31].mxu1  ;;  %1994 = vmax.xlane.f32.xlu1 %v1993_v23  ;;  %v1996_v25 = vsel %vm1802_vm3, %v1982_v20, -inf  ;;  %v2374_v23 = vsel %vm2042_vm4, %v2231_v18, 0  ;;  %v3500_v18 = vld [vmem:[%s3906_s10 + $0x8] sm:$0xff]  }
 0x2b7   : > { %1997 = vmax.xlane.f32.xlu1 %v1996_v25 }
 0x338   : > { %v1989_v26 = vpop.xlane.xlu0 %1988 }
 0x339   : > { %v1999_v27 = vsub.f32 %v1844_v1, %v1989_v26  ;;  %v2182_v1 = vsel %vm2042_vm4, %v2038_v62, 0 }
 0x33b   : > { %v2003_v28 = vmul.f32 1.442695, %v1999_v27 }
 0x33c   : > { %v1992_v29 = vpop.xlane.xlu0 %1991 }
 0x33d   : > { %3503 = vpow2.f32 %v2003_v28  ;;  %v2000_v30 = vsub.f32 %v1890_v6, %v1992_v29 }
 0x33f   : > { %v2005_v31 = vmul.f32 1.442695, %v2000_v30 }
 0x340   : > { %v1995_v32 = vpop.xlane.xlu1 %1994 }
 0x341   : > { %3505 = vpow2.f32 %v2005_v31  ;;  %v2001_v33 = vsub.f32 %v1936_v16, %v1995_v32  ;;  %v2328_v16 = vsel %vm2042_vm4, %v2230_v10, 0 }
 0x343   : > { %v2007_v34 = vmul.f32 1.442695, %v2001_v33 }
 0x344   : > { %v1998_v35 = vpop.xlane.xlu1 %1997 }
 0x345   : > { %3507 = vpow2.f32 %v2007_v34  ;;  %v2002_v36 = vsub.f32 %v1982_v20, %v1998_v35 }
 0x347   : > { %v3504_v37 = vpop.eup %3503  ;;  %v2009_v38 = vmul.f32 1.442695, %v2002_v36 }
 0x348   : > { %v2011_v39 = vsel %vm1802_vm3, %v3504_v37, 0.0 }
 0x349   : > { %3509 = vpow2.f32 %v2009_v38  ;;  %2012 = vadd.xlane.f32.xlu0 %v2011_v39 }
 0x34b   : > { %v3506_v40 = vpop.eup %3505 }
 0x34c   : > { %v2014_v41 = vsel %vm1802_vm3, %v3506_v40, 0.0 }
 0x34d   : > { %2015 = vadd.xlane.f32.xlu1 %v2014_v41 }
 0x34f   : > { %v3508_v42 = vpop.eup %3507 }
 0x350   : > { %v2017_v43 = vsel %vm1802_vm3, %v3508_v42, 0.0 }
 0x351   : > { %2018 = vadd.xlane.f32.xlu0 %v2017_v43 }
 0x353   : > { %v3510_v44 = vpop.eup %3509 }
 0x354   : > { %v2020_v45 = vsel %vm1802_vm3, %v3510_v44, 0.0 }
 0x355   : > { %2021 = vadd.xlane.f32.xlu1 %v2020_v45 }
 0x3d6   : > { %v2013_v46 = vpop.xlane.xlu0 %2012 }
 0x3d7   : > { %3511 = vrcp.f32 %v2013_v46 }
 0x3da   : > { %v2016_v47 = vpop.xlane.xlu1 %2015 }
 0x3db   : > { %3513 = vrcp.f32 %v2016_v47 }
 0x3de   : > { %v2019_v50 = vpop.xlane.xlu0 %2018 }
 0x3df   : > { %3515 = vrcp.f32 %v2019_v50 }
 0x3e1   : > { %v3512_v52 = vpop.eup %3511 }
 0x3e2   : > { %v2027_v57 = vmul.f32 %v3512_v52, %v3504_v37  ;;  %v2022_v58 = vpop.xlane.xlu1 %2021 }
 0x3e3   : > { %3517 = vrcp.f32 %v2022_v58 }
 0x3e4   : > { %v2031_v59 = vpack.c.bf16 %v2027_v57, %v2027_v57  ;;  %v3099_v57 = vld [vmem:[%s4360_s18] ss:$0 sm:$0xff] }
 0x3e5   : > { %v3514_v60 = vpop.eup %3513 }
 0x3e6   : > { %v2028_v63 = vmul.f32 %v3514_v60, %v3506_v40  ;;  %3323 = vmatmul.mubr.msk.bf16.vlgmr.msra.gmra.mrb[32].mxu0 %vm1802_vm3, %v2031_v59 }
 0x3e7   : > { %3333 = vmatpush3.bf16.msra.mxu0 %v2136_v61  ;;  %3334 = vmatprep.mubr.msk.bf16.mxu0 %vm3629_vm1, %v3628_v11 }
 0x3e8   : > { %v2032_v55 = vpack.c.bf16 %v2028_v63, %v2028_v63  ;;  %3344 = vmatprep.subr.bf16.mxu0 %v3628_v11 }
 0x3e9   : > { %v3516_v0 = vpop.eup %3515 }
 0x3ea   : > { %v2029_v2 = vmul.f32 %v3516_v0, %v3508_v42  ;;  %3329 = vmatmul.mubr.msk.bf16.vlgmr.msra.gmra.mrb[32].mxu1 %vm1802_vm3, %v2032_v55 }
 0x3eb   : > { %3339 = vmatpush3.bf16.msra.mxu1 %v2182_v1  ;;  %3340 = vmatprep.mubr.msk.bf16.mxu1 %vm3629_vm1, %v3628_v11 }
 0x3ec   : > { %v2033_v3 = vpack.c.bf16 %v2029_v2, %v2029_v2  ;;  %3350 = vmatprep.subr.bf16.mxu1 %v3628_v11 }
 0x3ed   : > { %v3518_v5 = vpop.eup %3517 }
 0x3ee   : > { %v2030_v6 = vmul.f32 %v3518_v5, %v3510_v44  ;;  %3335 = vmatmul.mubr.msk.bf16.vlgmr.msra.gmra.mrb[36].mxu0 %vm1802_vm3, %v2033_v3  ;;  %v3498_v5 = vld [vmem:[%s3896_s8 + $0x8] sm:$0xff]  }
 0x3ef   : > { %3345 = vmatpush3.bf16.msra.mxu0 %v2236_v4  ;;  %3346 = vmatprep.mubr.msk.bf16.mxu0 %vm3629_vm1, %v3628_v11  ;;  %v3497_v4 = vld [vmem:[%s3896_s8] sm:$0xff]   ;;  %s4363_s8 = sld [smem:[#allocation35_spill]] }
 0x3f0   : > { %v2034_v7 = vpack.c.bf16 %v2030_v6, %v2030_v6  ;;  %3356 = vmatprep.subr.bf16.mxu0 %v3628_v11 }
 0x3f2   : > { %3341 = vmatmul.mubr.msk.bf16.vlgmr.msra.gmra.mrb[36].mxu1 %vm1802_vm3, %v2034_v7 }
 0x3f3   : > { %3352 = vmatprep.mubr.msk.bf16.mxu1 %vm3629_vm1, %v3628_v11  ;;  %3351 = vmatpush3.bf16.msra.mxu1 %v2282_v9  ;;  %v3100_v9 = vld [vmem:[%s4362_s26] ss:$0 sm:$0xff] }
 0x3f4   : > { %3362 = vmatprep.subr.bf16.mxu1 %v3628_v11 }
 0x3f5   : > { %s4364_s6 = scalar_lea.vmem %s4363_s8, %s3828_s27 }
 0x4b9   : > { %v2080_v12 = vpop.f32.mrb[32].mxu0 }
 0x4ba   : > { %v2224_v13 = vpack.c.bf16 %v2080_v12, %v2080_v12  ;;  %v3324_v14 = vpop.f32.mrb[33].mxu0  ;;  %v3101_v12 = vld [vmem:[%s4364_s6] ss:$0 sm:$0xff] }
 0x4bb   : > { %v2083_v17 = vpop.f32.mrb[34].mxu0 }
 0x4bc   : > { %v3325_v19 = vpop.f32.mrb[35].mxu0  ;;  %3347 = vmatmul.mubr.msk.bf16.vlgmr.msra.gmra.mrb[40].mxu0 %vm1802_vm3, %v2224_v13  ;;  %v3499_v17 = vld [vmem:[%s3906_s10] sm:$0xff]  }
 0x4bd   : > { %v2126_v20 = vpop.f32.mrb[32].mxu1  ;;  %3357 = vmatpush3.bf16.msra.mxu0 %v2328_v16  ;;  %3358 = vmatprep.mubr.msk.bf16.mxu0 %vm3629_vm1, %v3628_v11  ;;  %v3501_v19 = vld [vmem:[%s3906_s10 + $0x10] sm:$0xff]  }
 0x4be   : > { %v2225_v21 = vpack.c.bf16 %v2126_v20, %v2126_v20  ;;  %v3330_v22 = vpop.f32.mrb[33].mxu1  ;;  %3368 = vmatprep.subr.bf16.mxu0 %v3628_v11  ;;  %v3502_v20 = vld [vmem:[%s3906_s10 + $0x18] sm:$0xff]  }
 0x4bf   : > { %v2129_v24 = vpop.f32.mrb[34].mxu1 }
 0x4c0   : > { %v3331_v25 = vpop.f32.mrb[35].mxu1  ;;  %3353 = vmatmul.mubr.msk.bf16.vlgmr.msra.gmra.mrb[40].mxu1 %vm1802_vm3, %v2225_v21  ;;  %v3102_v21 = vld [vmem:[%s976_s3] ss:$0 sm:$0xff] }
 0x4c1   : > { %v2172_v26 = vpop.f32.mrb[36].mxu0  ;;  %3363 = vmatpush3.bf16.msra.mxu1 %v2374_v23  ;;  %3364 = vmatprep.mubr.msk.bf16.mxu1 %vm3629_vm1, %v3628_v11 }
 0x4c2   : > { %v2226_v27 = vpack.c.bf16 %v2172_v26, %v2172_v26  ;;  %v3336_v28 = vpop.f32.mrb[37].mxu0  ;;  %3376 = vmatprep.subr.bf16.mxu1 %v3628_v11 }
 0x4c3   : > { %v2175_v29 = vpop.f32.mrb[38].mxu0 }
 0x4c4   : > { %v3337_v30 = vpop.f32.mrb[39].mxu0  ;;  %3359 = vmatmul.mubr.msk.bf16.vlgmr.msra.gmra.mrb[44].mxu0 %vm1802_vm3, %v2226_v27 }
 0x4c5   : > { %v2218_v31 = vpop.f32.mrb[36].mxu1  ;;  %3372 = vmatprep.mubr.msk.bf16.mxu0 %vm3629_vm1, %v3628_v11  ;;  %3369 = vmatpush3.bf16.msra.mxu0 %v3497_v4 }
 0x4c6   : > { %v2227_v32 = vpack.c.bf16 %v2218_v31, %v2218_v31  ;;  %v3342_v33 = vpop.f32.mrb[37].mxu1  ;;  %3370 = vmatprep.subr.bf16.mxu0 %v3628_v11 }
 0x4c7   : > { %v2221_v34 = vpop.f32.mrb[38].mxu1 }
 0x4c8   : > { %v3343_v35 = vpop.f32.mrb[39].mxu1  ;;  %3365 = vmatmul.mubr.msk.bf16.vlgmr.msra.gmra.mrb[44].mxu1 %vm1802_vm3, %v2227_v32 }
 0x4c9   : > { %3384 = vmatprep.mubr.msk.bf16.mxu1 %vm3629_vm1, %v3628_v11  ;;  %3371 = vmatpush3.bf16.msra.mxu0 %v3498_v5 }
 0x4ca   : > { %3377 = vmatpush3.bf16.msra.mxu1 %v3499_v17 }
 0x4cb   : > { %3378 = vmatprep.subr.bf16.mxu1 %v3628_v11 }
 0x4ce   : > { %3379 = vmatpush3.bf16.msra.mxu1 %v3500_v18 }
 0x4cf   : > { %3380 = vmatprep.subr.bf16.mxu1 %v3628_v11 }
 0x4d2   : > { %3381 = vmatpush3.bf16.msra.mxu1 %v3501_v19 }
 0x4d3   : > { %3382 = vmatprep.subr.bf16.mxu1 %v3628_v11 }
 0x4d6   : > { %3383 = vmatpush3.bf16.msra.mxu1 %v3502_v20 }
 0x58f   : > { %v2272_v36 = vpop.f32.mrb[40].mxu0 }
 0x590   : > { %v3348_v37 = vpop.f32.mrb[41].mxu0  ;;  %v2416_v41 = vsel %vm1079_vm2, %v2272_v36, 0.0  ;;  %v3106_v36 = vld [vmem:[%s984_s17] ss:$0 sm:$0xff] }
 0x591   : > { %v2275_v38 = vpop.f32.mrb[42].mxu0 }
 0x592   : > { %v3349_v39 = vpop.f32.mrb[43].mxu0 }
 0x593   : > { %v2318_v40 = vpop.f32.mrb[40].mxu1 }
 0x594   : > { %v2417_v42 = vsel %vm1079_vm2, %v2318_v40, 0.0  ;;  %v3354_v43 = vpop.f32.mrb[41].mxu1 }
 0x595   : > { %v2418_v44 = vadd.f32 %v2417_v42, %v2416_v41  ;;  %v2321_v45 = vpop.f32.mrb[42].mxu1 }
 0x596   : > { %v3355_v46 = vpop.f32.mrb[43].mxu1 }
 0x597   : > { %v2364_v47 = vpop.f32.mrb[44].mxu0 }
 0x598   : > { %v2419_v48 = vsel %vm1079_vm2, %v2364_v47, 0.0  ;;  %v3360_v49 = vpop.f32.mrb[45].mxu0 }
 0x599   : > { %v2420_v50 = vadd.f32 %v2419_v48, %v2418_v44  ;;  %v2367_v51 = vpop.f32.mrb[46].mxu0 }
 0x59a   : > { %v3361_v52 = vpop.f32.mrb[47].mxu0 }
 0x59b   : > { %v2410_v53 = vpop.f32.mrb[44].mxu1 }
 0x59c   : > { %v2421_v54 = vsel %vm1079_vm2, %v2410_v53, 0.0  ;;  %v3366_v58 = vpop.f32.mrb[45].mxu1  ;;  %v3112_v53 = vld [vmem:[%s987_s30] ss:$0 sm:$0xff] }
 0x59d   : > { %v2422_v59 = vadd.f32 %v2421_v54, %v2420_v50  ;;  %v2413_v60 = vpop.f32.mrb[46].mxu1 }
 0x59e   : > { %v3367_v61 = vpop.f32.mrb[47].mxu1  ;;  %v3525_v60 = vld [vmem:[%s4369_s19] sm:$0xff] (!%p3114_p1)  }
 0x59f   : > { %v2430_v62 = vadd.f32 %v3099_v57, %v2422_v59  ;;  %v3113_v57 = vld [vmem:[%s990_s12] ss:$0 sm:$0xff]  ;;  %v3630_v61 = vmov (!%p3114_p1), 0.0  }
 0x5a0   : > { %3388 = vmatprep.subr.bf16.mxu0 (!%p3114_p1), %v3630_v61 }
 0x5a1   : > { %v2431_v63 = vadd.f32 %v2430_v62, %v3938_v15  ;;  %v3526_v62 = vld [vmem:[%s4369_s19 + $0x8] sm:$0xff] (!%p3114_p1)  }
 0x5a3   : > { %v2434_v55 = vsel %vm1079_vm2, %v2431_v63, 0.0 }
 0x5a4   : > { %2435 = vadd.xlane.f32.xlu0 %v2434_v55 }
 0x631   : > { %v2436_v0 = vpop.xlane.xlu0 %2435 }
 0x632   : > { %v2438_v56 = vmul.f32 0.03125, %v2436_v0 }
 0x634   : > { %v2439_v1 = vsub.f32 %v2431_v63, %v2438_v56  ;;  %v2657_v63 = vld [vmem:[%s3841_s21] sm:$0xff] (!%p3114_p1) }
 0x635   : > { %v3115_v56 = vld [vmem:[%s4370_s29] ss:$0 sm:$0xff] (!%p3114_p1) }
 0x636   : > { %v2440_v2 = vmul.f32 %v2439_v1, %v2439_v1 }
 0x638   : > { %v2441_v3 = vsel %vm1079_vm2, %v2440_v2, 0.0 }
 0x639   : > { %2442 = vadd.xlane.f32.xlu1 %v2441_v3 }
 0x6c6   : > { %v2443_v15 = vpop.xlane.xlu1 %2442 }
 0x6c7   : > { %v2444_v6 = vmul.f32 0.03125, %v2443_v15 }
 0x6c9   : > { %v2445_v7 = vadd.f32 1e-12, %v2444_v6 }
 0x6cb   : > { %3519 = vrsqrt.f32 %v2445_v7 }
 0x6d5   : > { %v3520_v8 = vpop.eup %3519 }
 0x6d6   : > { %v2447_v10 = vmul.f32 %v3520_v8, %v2439_v1 }
 0x6d8   : > { %v2454_v13 = vmul.f32 %v3100_v9, %v2447_v10 }
 0x6da   : > { %v2461_v14 = vadd.f32 %v3101_v12, %v2454_v13 }
 0x6dc   : > { %v2462_v16 = vpack.c.bf16 %v2461_v14, %v2461_v14 }
 0x6de   : > { %3373 = vmatmul.mubr.msk.bf16.vlgmr.msra.gmra.mrb[48].mxu0 %vm1079_vm2, %v2462_v16 }
 0x6df   : > { %3389 = vmatpush3.bf16.msra.mxu0 (!%p3114_p1), %v3525_v60  ;;  %3392 = vmatprep.mubr.msk.bf16.mxu0 (!%p3114_p1), %vm3631_vm6, %v3630_v61 }
 0x6e0   : > { %3390 = vmatprep.subr.bf16.mxu0 (!%p3114_p1), %v3630_v61 }
 0x6e3   : > { %3391 = vmatpush3.bf16.msra.mxu0 (!%p3114_p1), %v3526_v62 }
 0x7b1   : > { %v2523_v22 = vpop.f32.mrb[48].mxu0 }
 0x7b2   : > { %v2524_v23 = vadd.f32 %v3102_v21, %v2523_v22  ;;  %v3374_v24 = vpop.f32.mrb[49].mxu0 }
 0x7b3   : > { %v2526_v25 = vpop.f32.mrb[50].mxu0 }
 0x7b4   : > { %v2530_v26 = vmul.f32 0.044715, %v2524_v23  ;;  %v3375_v27 = vpop.f32.mrb[51].mxu0  ;;  %v2529_v11 = vmul.f32 0.5, %v2524_v23 }
 0x7b6   : > { %v2531_v28 = vmul.f32 %v2530_v26, %v2524_v23 }
 0x7b8   : > { %v2532_v29 = vmul.f32 %v2531_v28, %v2524_v23 }
 0x7ba   : > { %v2533_v30 = vadd.f32 %v2532_v29, %v2524_v23 }
 0x7bc   : > { %v2534_v31 = vmul.f32 0.7978846, %v2533_v30 }
 0x7be   : > { %3521 = vtanh.f32 %v2534_v31 }
 0x7c8   : > { %v3522_v32 = vpop.eup %3521 }
 0x7c9   : > { %v2536_v33 = vadd.f32 1.0, %v3522_v32 }
 0x7cb   : > { %v2537_v34 = vmul.f32 %v2536_v33, %v2529_v11 }
 0x7cd   : > { %v2538_v35 = vpack.c.bf16 %v2537_v34, %v2537_v34 }
 0x7cf   : > { %3385 = vmatmul.mubr.msk.bf16.vlgmr.msra.gmra.mrb[48].mxu1 %vm2578_vm5, %v2538_v35 }
 0x8a2   : > { %v2616_v37 = vpop.f32.mrb[48].mxu1 }
 0x8a3   : > { %v2617_v38 = vadd.f32 %v3106_v36, %v2616_v37  ;;  %v3386_v39 = vpop.f32.mrb[49].mxu1 }
 0x8a4   : > { %v2619_v40 = vpop.f32.mrb[50].mxu1 }
 0x8a5   : > { %v3387_v41 = vpop.f32.mrb[51].mxu1  ;;  %v2622_v42 = vadd.f32 %v2617_v38, %v2461_v14 }
 0x8a7   : > { %v2625_v43 = vsel %vm1079_vm2, %v2622_v42, 0.0 }
 0x8a8   : > { %2626 = vadd.xlane.f32.xlu0 %v2625_v43 }
 0x935   : > { %v2627_v44 = vpop.xlane.xlu0 %2626 }
 0x936   : > { %v2628_v45 = vmul.f32 0.03125, %v2627_v44 }
 0x938   : > { %v2629_v46 = vsub.f32 %v2622_v42, %v2628_v45 }
 0x93a   : > { %v2630_v47 = vmul.f32 %v2629_v46, %v2629_v46 }
 0x93c   : > { %v2631_v48 = vsel %vm1079_vm2, %v2630_v47, 0.0 }
 0x93d   : > { %2632 = vadd.xlane.f32.xlu1 %v2631_v48 }
 0x9ca   : > { %v2633_v49 = vpop.xlane.xlu1 %2632 }
 0x9cb   : > { %v2634_v50 = vmul.f32 0.03125, %v2633_v49 }
 0x9cd   : > { %v2635_v51 = vadd.f32 1e-12, %v2634_v50 }
 0x9cf   : > { %3523 = vrsqrt.f32 %v2635_v51 }
 0x9d9   : > { %v3524_v52 = vpop.eup %3523 }
 0x9da   : > { %v2637_v54 = vmul.f32 %v3524_v52, %v2629_v46  ;;  %2656 = sbr.rel (%p3114_p1) target bundleno = 3061 (0xbf5), region = 116 }
 0x9dc   : > { %v2644_v58 = vmul.f32 %v3112_v53, %v2637_v54 }
 0x9de   : > { %v2651_v59 = vadd.f32 %v3113_v57, %v2644_v58 }
 0x9e0   : > { %2652 = vst.msk [vmem:[#allocation2] sm:$0xff] %vm1079_vm2, %v2651_v59  ;;  %v2658_v55 = vadd.f32 (!%p3114_p1), %v2657_v63, %v2651_v59 }
 0x9e2   : > { %v2659_v0 = vpack.c.bf16 %v2658_v55, %v2658_v55 }
 0x9e4   : > { %3393 = vmatmul.mubr.msk.bf16.vlgmr.msra.gmra.mrb[0].mxu0 %vm1079_vm2, %v2659_v0 }
 0xab7   : > { %v2720_v1 = vpop.f32.mrb[0].mxu0 }
 0xab8   : > { %v2721_v2 = vadd.f32 %v3115_v56, %v2720_v1  ;;  %v3394_v3 = vpop.f32.mrb[1].mxu0 }
 0xab9   : > { %v2723_v4 = vpop.f32.mrb[2].mxu0 }
 0xaba   : > { %2726 = vmax.xlane.f32.xlu0 %v2721_v2  ;;  %v3395_v5 = vpop.f32.mrb[3].mxu0 }
 0xb47   : > { %v2727_v15 = vpop.xlane.xlu0 %2726 }
 0xb48   : > { %v2728_v6 = vsub.f32 %v2721_v2, %v2727_v15 }
 0xb4a   : > { %v2729_v7 = vmul.f32 1.442695, %v2728_v6 }
 0xb4c   : > { %3527 = vpow2.f32 %v2729_v7 }
 0xb56   : > { %v3528_v8 = vpop.eup %3527 }
 0xb57   : > { %2731 = vadd.xlane.f32.xlu0 %v3528_v8 }
 0xbe4   : > { %v2732_v9 = vpop.xlane.xlu0 %2731 }
 0xbe5   : > { %3529 = vlog2.f32 %v2732_v9 }
 0xbef   : > { %v3530_v10 = vpop.eup %3529 }
 0xbf0   : > { %v2734_v12 = vmul.f32 0.6931472, %v3530_v10 }
 0xbf2   : > { %v2735_v13 = vsub.f32 %v2728_v6, %v2734_v12 }
 0xbf4   : > { %2736 = vst [vmem:[%s916_s28] sm:$0xff] %v2735_v13 }
 0xbf5 PF: > { %s4371_s21 = sld [smem:[#allocation10_spill]]  ;;  %s4372_s26 = sld [smem:[#allocation7_spill]] }
 0xbf6   : > { %s4374_s13 = sld [smem:[#allocation42_spill]]  ;;  %s2751_s10 = sshll.u32 %s916_s28, 4  ;;  %s2752_s10 = int_to_ptr.vmem [resolvable:$true] %s2751_s10 }
 0xbf7   : > { %s3531_s17 = scalar_lea.vmem %s2752_s10, 128  ;;  %s3632_s2 = smov [#allocation3]  }
 0xbf8   : > { %p3532_p2 = scmp.ne.s32.totalorder %s2752_s10, %s3531_s17  ;;  %s3535_s23 = sshll.u32 %s3632_s2, 4  ;;  %s3536_s23 = int_to_ptr.vmem [resolvable:$false] %s3535_s23 }
 0xbf9   : > { %s3537_s4 = scalar_lea.vmem %s3536_s23, 256  ;;  %p3538_p6 = scmp.lt.s32.totalorder %s2752_s10, %s3536_s23 }
 0xbfa   : > { %p3533_p4 = pnand %p3532_p2, %p3797_p3  ;;  %p3539_p7 = scmp.lt.s32.totalorder %s3537_s4, %s3531_s17 }
 0xbfb   : > { %s3120_s20 = sshll.u32 %s4371_s21, 7  ;;  %s4375_s3 = sand.u32 1, %s4372_s26  }
 0xbfc   : > { %s4203_s14 = scalar_lea.hbm %s4374_s13, %s3120_s20  ;;  %s2738_s22 = scalar_lea.sflag [#allocation4], %s4375_s3 }
 0xbfd   : > { %p3534_p5 = pneg %p3533_p4  ;;  %p3540_p8 = por %p3539_p7, %p3538_p6 }
 0xbff   : > { %p3541_p10 = pnand %p3540_p8, %p3534_p5 }
 0xc01   : > { %3544 = shalt.err (!%p3541_p10)
}
 0xc02   : > { %s3545_s0 = scalar_lea.hbm %s4203_s14, 128  ;;  %s3549_s7 = scalar_lea.hbm %s4374_s13, 256 }
 0xc03   : > { %p3546_p11 = scmp.ne.s32.totalorder %s4203_s14, %s3545_s0  ;;  %p3550_p0 = scmp.lt.u32.totalorder %s4203_s14, %s4374_s13 }
 0xc04   : > { %p3551_p1 = scmp.lt.u32.totalorder %s3549_s7, %s3545_s0  ;;  %p3553_p4 = scmp.lt.u32.totalorder %s3545_s0, %s4203_s14 }
 0xc05   : > { %p3547_p12 = pnand %p3546_p11, %p3797_p3 }
 0xc06   : > { %p3552_p2 = por %p3551_p1, %p3550_p0 }
 0xc07   : > { %p3548_p13 = pneg %p3547_p12 }
 0xc08   : > { %p3554_p5 = por %p3553_p4, %p3552_p2 }
 0xc0a   : > { %p3555_p6 = pnand %p3554_p5, %p3548_p13 }
 0xc0c   : > { %3558 = shalt.err (!%p3555_p6)
}
 0xc0d   : > { %3396 = dma.vmem_to_hbm [thread:$0]  (%p3797_p3), %s2752_s10, 128, %s4203_s14, %s2738_s22  }
 0xc0e PF: > { %s4376_s18 = sld [smem:[#allocation13_spill]]  ;;  %s4377_s30 = sld [smem:[#allocation6_spill]] }
 0xc14   : > { %p3402_p7 = scmp.ge.s32.totalorder %s4376_s18, 2  ;;  %s2763_s12 = sand.u32 1, %s4377_s30  }
 0xc15   : > { %s2764_s27 = scalar_lea.sflag [#allocation4], %s2763_s12 }
 0xc16   : > { %p3399_p8 = pnand %p3402_p7, %p3807_p9 }
 0xc18   : > { %3592 = dma.done.wait (!%p3399_p8), %s2764_s27, 128  }
 0xc19   : > { %3594 = vsyncadd (!%p3399_p8), %s2764_s27, 4294967168  ;;  %s35_s1 = sadd.s32 1, %s4376_s18   ;;  %s4379_s3 = sld [smem:[#allocation7_spill]] }
 0xc1a   : > { %p32_p10 = scmp.ge.s32.totalorder %s35_s1, 6   ;;  %s4380_s28 = sld [smem:[#allocation8_spill]] }
 0xc1b   : > { %s4381_s29 = sld [smem:[#allocation18_spill]]  ;;  %s4382_s30 = sld [smem:[#allocation11_spill]] }
 0xc1c   : > { %s4383_s4 = sld [smem:[#allocation12_spill]]  ;;  %s4384_s0 = sld [smem:[#allocation14_spill]] }
 0xc1d   : > { %s4385_s23 = sld [smem:[#allocation16_spill]]  ;;  %34 = sbr.rel (!%p32_p10) target bundleno = 26 (0x1a), region = 205 }
 0xc24   :  { %2769 = vsyncpa [#allocation4], 1 }
 0xc25   :  { %2771 = vsyncpa [#allocation4 + $0x1], 1 }

</bundles_post_ra>
